<compile_context>
chip_gen: v5e
topology: v5e:2x2
jax: 0.10.0
libtpu: 0.0.40
codegen_flags: <defaults>
</compile_context>

<pallas_src>
import functools
from dataclasses import dataclass

import jax
import jax.numpy as jnp
from jax.experimental import pallas as pl
from jax.experimental.pallas import tpu as pltpu

# bf16 operands on the MXU (f32 accumulate).  Use jnp.float32 for exact parity
# with the all-f32 PyTorch reference.
MATMUL_DTYPE = jnp.bfloat16


def _mm(x, w):
    """x: (M, K), w: (N, K) [torch nn.Linear weight layout] -> (M, N), f32 accumulate."""
    return jax.lax.dot_general(
        x.astype(MATMUL_DTYPE), w.astype(MATMUL_DTYPE),
        (((1,), (1,)), ((), ())), preferred_element_type=jnp.float32)


def _rmsnorm(x, w, eps):
    # f32 math: mean of squares -> rsqrt -> scale.
    return x * jax.lax.rsqrt(jnp.mean(x * x, axis=-1, keepdims=True) + eps) * w


# ----------------------------- Pallas kernels -----------------------------

def mixer_block_kernel(h_ref, mnw_ref, fnw_ref, cosf_ref, sinf_ref, pswap_ref,
                       mw1_ref, mw3p_ref, wo_ref, w1_ref, w2_ref, w3_ref,
                       o_ref, *, eps):
    """One full MixerBlock for one batch element (grid step)."""
    x = h_ref[0].astype(jnp.float32)                      # (S, D)

    # --- mix_norm (RMSNorm, f32) ---
    xn = _rmsnorm(x, mnw_ref[...], eps)

    # --- rotary embedding, interleaved layout, no lane-strided gathers ---
    #   y[:, 2i]   = x[:, 2i]*cos_i - x[:, 2i+1]*sin_i
    #   y[:, 2i+1] = x[:, 2i+1]*cos_i + x[:, 2i]*sin_i
    # pair-swap (d -> d^1) done as a (D, D) 0/1 permutation matmul on the MXU.
    xr = xn * cosf_ref[...] + _mm(xn, pswap_ref[...]) * sinf_ref[...]

    # --- Mix token mixing, algebraically factored ---
    #   out[s, d] = xr[s, d] * sum_j silu(xr[s, d] * mw1[s, j]) * mw3p[s, j]
    # mw1 = mask @ w1.T ; mw3p = (mask @ w3.T) * (wm @ w2)   (precomputed outside).
    mw1 = mw1_ref[...]                                    # (S, S) f32
    mw3p = mw3p_ref[...]                                  # (S, S) f32
    red = jnp.zeros_like(xr)                              # (S, D), D lane-dense
    for j in range(mw1.shape[1]):                         # S is small & static -> unrolled
        red = red + jax.nn.silu(xr * mw1[:, j:j + 1]) * mw3p[:, j:j + 1]
    h1 = x + _mm(xr * red, wo_ref[...])                   # wo + residual, already (S, D)

    # --- ffn_norm + SwiGLU FeedForward + residual ---
    hn = _rmsnorm(h1, fnw_ref[...], eps)
    g = jax.nn.silu(_mm(hn, w1_ref[...])) * _mm(hn, w3_ref[...])   # (S, H)
    o_ref[0] = (h1 + _mm(g, w2_ref[...])).astype(o_ref.dtype)


def lm_head_kernel(h_ref, nw_ref, ow_ref, o_ref, *, eps):
    x = h_ref[0].astype(jnp.float32)                      # (S, D)
    xn = _rmsnorm(x, nw_ref[...], eps)
    o_ref[0] = _mm(xn, ow_ref[...]).astype(o_ref.dtype)   # (S, V)


# ----------------------------- wrappers -----------------------------

def mixer_block(h, mnw, fnw, cos_full, sin_signed, pswap, mw1, mw3p,
                wo, w1, w2, w3, eps):
    B, S, D = h.shape
    H = w1.shape[0]
    full = lambda b: (0, 0)
    w_bytes = 2 if MATMUL_DTYPE == jnp.bfloat16 else 4
    flops = int(B * (4 * S * D * D + 6 * S * D * H + 4 * S * S * D))
    transc = int(B * (S * S * D + S * H + 2 * S))
    bytes_acc = int(4 * (2 * B * S * D + 2 * D + 2 * S * D + 2 * S * S)
                    + w_bytes * (2 * D * D + 3 * D * H))
    return pl.pallas_call(
        functools.partial(mixer_block_kernel, eps=eps),
        out_shape=jax.ShapeDtypeStruct((B, S, D), h.dtype),
        grid=(B,),
        in_specs=[
            pl.BlockSpec((1, S, D), lambda b: (b, 0, 0)),   # residual stream
            pl.BlockSpec((1, D), full),                     # mix_norm weight
            pl.BlockSpec((1, D), full),                     # ffn_norm weight
            pl.BlockSpec((S, D), full),                     # cos, pair-expanded
            pl.BlockSpec((S, D), full),                     # sin, pair-expanded + sign
            pl.BlockSpec((D, D), full),                     # pair-swap permutation
            pl.BlockSpec((S, S), full),                     # mask @ w1.T
            pl.BlockSpec((S, S), full),                     # (mask @ w3.T) * (wm @ w2)
            pl.BlockSpec((D, D), full),                     # mix wo
            pl.BlockSpec((H, D), full),                     # ffn w1
            pl.BlockSpec((D, H), full),                     # ffn w2
            pl.BlockSpec((H, D), full),                     # ffn w3
        ],
        out_specs=pl.BlockSpec((1, S, D), lambda b: (b, 0, 0)),
        compiler_params=pltpu.CompilerParams(dimension_semantics=("parallel",)),
        cost_estimate=pl.CostEstimate(flops=flops, transcendentals=transc,
                                      bytes_accessed=bytes_acc),
    )(h, mnw, fnw, cos_full, sin_signed, pswap, mw1, mw3p, wo, w1, w2, w3)


def lm_head(h, nw, ow, eps):
    B, S, D = h.shape
    V = ow.shape[0]
    full = lambda b: (0, 0)
    w_bytes = 2 if MATMUL_DTYPE == jnp.bfloat16 else 4
    return pl.pallas_call(
        functools.partial(lm_head_kernel, eps=eps),
        out_shape=jax.ShapeDtypeStruct((B, S, V), h.dtype),
        grid=(B,),
        in_specs=[
            pl.BlockSpec((1, S, D), lambda b: (b, 0, 0)),
            pl.BlockSpec((1, D), full),
            pl.BlockSpec((V, D), full),
        ],
        out_specs=pl.BlockSpec((1, S, V), lambda b: (b, 0, 0)),
        compiler_params=pltpu.CompilerParams(dimension_semantics=("parallel",)),
        cost_estimate=pl.CostEstimate(
            flops=int(2 * B * S * D * V),
            transcendentals=int(B * S),
            bytes_accessed=int(4 * (B * S * D + B * S * V + D) + w_bytes * V * D)),
    )(h, nw, ow)


# ----------------------------- model glue -----------------------------

@dataclass
class ModelArgs:
    dim: int = 32
    n_layers: int = 2
    vocab_size: int = 64
    ffn_dim_multiplier: int = 4
    norm_eps: float = 1e-5
    max_batch_size: int = 2
    max_seq_len: int = 8


def precompute_freqs(dim, end, theta=10000.0):
    freqs = 1.0 / theta ** (jnp.arange(0, dim, 2)[: dim // 2].astype(jnp.float32) / dim)
    t = jnp.arange(end, dtype=jnp.float32)
    ang = jnp.outer(t, freqs)
    return jnp.cos(ang), jnp.sin(ang)


def init_params(key, args: ModelArgs):
    D, S, V = args.dim, args.max_seq_len, args.vocab_size
    H = D * args.ffn_dim_multiplier

    def nrm(k, shape, std=0.02):
        return std * jax.random.normal(k, shape, dtype=jnp.float32)

    keys = jax.random.split(key, 2 + args.n_layers)
    params = {
        'tok_emb': nrm(keys[0], (V, D)),       # nn.Embedding(V, D)
        'out_w':   nrm(keys[1], (V, D)),       # output Linear(D, V) weight (out, in)
        'norm_w':  jnp.ones((D,), jnp.float32),
        'layers':  [],
    }
    for i in range(args.n_layers):
        lk = jax.random.split(keys[2 + i], 8)
        params['layers'].append({
            'mix_ff_w1': nrm(lk[0], (S, S)),   # Mix.ff.w1  Linear(S, S)
            'mix_ff_w2': nrm(lk[1], (S, S)),   # Mix.ff.w2
            'mix_ff_w3': nrm(lk[2], (S, S)),   # Mix.ff.w3
            'mix_wm':    nrm(lk[3], (1, S)),   # Mix.wm     Linear(S, 1)
            'mix_wo':    nrm(lk[4], (D, D)),   # Mix.wo     Linear(D, D)
            'ffn_w1':    nrm(lk[5], (H, D)),   # FeedForward.w1 Linear(D, H)
            'ffn_w2':    nrm(lk[6], (D, H)),   # FeedForward.w2 Linear(H, D)
            'ffn_w3':    nrm(lk[7], (H, D)),   # FeedForward.w3 Linear(D, H)
            'mix_norm_w': jnp.ones((D,), jnp.float32),
            'ffn_norm_w': jnp.ones((D,), jnp.float32),
        })
    return params


def mixer_forward(tokens, params, args: ModelArgs, start_pos: int = 0):
    B, S = tokens.shape
    D = args.dim
    h = jnp.take(params['tok_emb'], tokens, axis=0)                 # (B, S, D)

    freq_start = min(start_pos, args.max_seq_len * 2 - 1)
    cos = params['freqs_cos'][freq_start:freq_start + S]            # (S, D/2)
    sin = params['freqs_sin'][freq_start:freq_start + S]
    # Pre-expand RoPE tables to full width (interleaved pairs) and fold the -/+
    # sign of the rotation into sin, so the kernel needs no lane shuffles.
    cos_full = jnp.repeat(cos, 2, axis=-1)                          # (S, D)
    sign = jnp.tile(jnp.array([-1.0, 1.0], jnp.float32), D // 2)
    sin_signed = jnp.repeat(sin, 2, axis=-1) * sign                 # (S, D)
    # Pair-swap permutation (d -> d^1) as a 0/1 matrix for the MXU.
    pswap = jnp.eye(D, dtype=jnp.float32)[jnp.arange(D) ^ 1].astype(MATMUL_DTYPE)

    # Reference: mask = torch.triu(torch.full(..., 0.0)) -> all-zero multiplicative mask.
    mask = jnp.zeros((args.max_seq_len, args.max_seq_len), jnp.float32)

    for lp in params['layers']:
        # Weight-only precompute: fold mask into the Mix first-stage projections
        # and wm (Linear(S,1)) into w2 — removes two (D*S,S)x(S,S) matmuls and the
        # (D,S,S) slab entirely.
        mw1 = mask @ lp['mix_ff_w1'].T                              # (S, S)
        wmw2 = lp['mix_wm'][0] @ lp['mix_ff_w2']                    # (S,)
        mw3p = (mask @ lp['mix_ff_w3'].T) * wmw2[None, :]           # (S, S)
        h = mixer_block(
            h,
            lp['mix_norm_w'].reshape(1, -1), lp['ffn_norm_w'].reshape(1, -1),
            cos_full, sin_signed, pswap, mw1, mw3p,
            lp['mix_wo'].astype(MATMUL_DTYPE),
            lp['ffn_w1'].astype(MATMUL_DTYPE),
            lp['ffn_w2'].astype(MATMUL_DTYPE),
            lp['ffn_w3'].astype(MATMUL_DTYPE),
            args.norm_eps)

    logits = lm_head(h, params['norm_w'].reshape(1, -1),
                     params['out_w'].astype(MATMUL_DTYPE), args.norm_eps)
    # TODO(synk): training branch (cross_entropy with ignore_index=-1) not exercised
    # here; inference forward (targets=None) returns loss=None like the reference.
    return logits, None


if __name__ == "__main__":
    args = ModelArgs()
    key = jax.random.PRNGKey(0)
    pkey, tkey = jax.random.split(key)

    params = init_params(pkey, args)
    params['freqs_cos'], params['freqs_sin'] = precompute_freqs(
        args.dim, args.max_seq_len * 2)

    # seqlen must equal max_seq_len (reference mask broadcast requires it)
    tokens = jax.random.randint(tkey, (args.max_batch_size, args.max_seq_len),
                                0, args.vocab_size)

    fwd = jax.jit(functools.partial(mixer_forward, args=args))
    logits, loss = fwd(tokens, params)
    jax.block_until_ready(logits)

    assert logits.shape == (args.max_batch_size, args.max_seq_len, args.vocab_size)
    assert loss is None
    print("KERNEL_OK")
</pallas_src>

<mosaic_0001>
module attributes {stable_mosaic.version = 11 : i64} {
  func.func @mixer_block_kernel(%arg0: i32, %arg1: memref<1x8x32xf32, #tpu.memory_space<vmem>>, %arg2: memref<1x32xf32, #tpu.memory_space<vmem>>, %arg3: memref<1x32xf32, #tpu.memory_space<vmem>>, %arg4: memref<8x32xf32, #tpu.memory_space<vmem>>, %arg5: memref<8x32xf32, #tpu.memory_space<vmem>>, %arg6: memref<32x32xbf16, #tpu.memory_space<vmem>>, %arg7: memref<8x8xf32, #tpu.memory_space<vmem>>, %arg8: memref<8x8xf32, #tpu.memory_space<vmem>>, %arg9: memref<32x32xbf16, #tpu.memory_space<vmem>>, %arg10: memref<128x32xbf16, #tpu.memory_space<vmem>>, %arg11: memref<32x128xbf16, #tpu.memory_space<vmem>>, %arg12: memref<128x32xbf16, #tpu.memory_space<vmem>>, %arg13: memref<1x8x32xf32, #tpu.memory_space<vmem>>) attributes {dimension_semantics = [#tpu.dimension_semantics<parallel>], iteration_bounds = array<i64: 2>, scalar_prefetch = 0 : i64, scratch_operands = 0 : i64, tpu.core_type = #tpu.core_type<tc>, window_params = [{transform_indices = @transform_0, window_bounds = array<i64: 1, 8, 32>}, {pipeline_mode = #tpu.pipeline_mode<synchronous>, transform_indices = @transform_1, window_bounds = array<i64: 1, 32>}, {pipeline_mode = #tpu.pipeline_mode<synchronous>, transform_indices = @transform_2, window_bounds = array<i64: 1, 32>}, {pipeline_mode = #tpu.pipeline_mode<synchronous>, transform_indices = @transform_3, window_bounds = array<i64: 8, 32>}, {pipeline_mode = #tpu.pipeline_mode<synchronous>, transform_indices = @transform_4, window_bounds = array<i64: 8, 32>}, {pipeline_mode = #tpu.pipeline_mode<synchronous>, transform_indices = @transform_5, window_bounds = array<i64: 32, 32>}, {pipeline_mode = #tpu.pipeline_mode<synchronous>, transform_indices = @transform_6, window_bounds = array<i64: 8, 8>}, {pipeline_mode = #tpu.pipeline_mode<synchronous>, transform_indices = @transform_7, window_bounds = array<i64: 8, 8>}, {pipeline_mode = #tpu.pipeline_mode<synchronous>, transform_indices = @transform_8, window_bounds = array<i64: 32, 32>}, {pipeline_mode = #tpu.pipeline_mode<synchronous>, transform_indices = @transform_9, window_bounds = array<i64: 128, 32>}, {pipeline_mode = #tpu.pipeline_mode<synchronous>, transform_indices = @transform_10, window_bounds = array<i64: 32, 128>}, {pipeline_mode = #tpu.pipeline_mode<synchronous>, transform_indices = @transform_11, window_bounds = array<i64: 128, 32>}, {transform_indices = @transform_12, window_bounds = array<i64: 1, 8, 32>}]} {
    %c0 = arith.constant 0 : index
    %c0_0 = arith.constant 0 : index
    %c0_1 = arith.constant 0 : index
    %0 = vector.load %arg1[%c0, %c0_0, %c0_1] : memref<1x8x32xf32, #tpu.memory_space<vmem>>, vector<1x8x32xf32>
    %1 = vector.shape_cast %0 : vector<1x8x32xf32> to vector<8x32xf32>
    %c0_2 = arith.constant 0 : index
    %c0_3 = arith.constant 0 : index
    %2 = vector.load %arg2[%c0_2, %c0_3] : memref<1x32xf32, #tpu.memory_space<vmem>>, vector<1x32xf32>
    %3 = arith.mulf %1, %1 : vector<8x32xf32>
    %cst = arith.constant dense<0.000000e+00> : vector<8xf32>
    %4 = vector.multi_reduction <add>, %3, %cst [1] : vector<8x32xf32> to vector<8xf32>
    %5 = vector.shape_cast %4 : vector<8xf32> to vector<8x1xf32>
    %cst_4 = arith.constant 3.200000e+01 : f32
    %6 = vector.broadcast %cst_4 : f32 to vector<8x1xf32>
    %7 = arith.divf %5, %6 : vector<8x1xf32>
    %cst_5 = arith.constant 9.99999974E-6 : f32
    %8 = vector.broadcast %cst_5 : f32 to vector<8x1xf32>
    %9 = arith.addf %7, %8 : vector<8x1xf32>
    %10 = math.rsqrt %9 : vector<8x1xf32>
    %11 = vector.broadcast %10 : vector<8x1xf32> to vector<8x32xf32>
    %12 = arith.mulf %1, %11 : vector<8x32xf32>
    %13 = vector.broadcast %2 : vector<1x32xf32> to vector<8x32xf32>
    %14 = arith.mulf %12, %13 : vector<8x32xf32>
    %c0_6 = arith.constant 0 : index
    %c0_7 = arith.constant 0 : index
    %15 = vector.load %arg4[%c0_6, %c0_7] : memref<8x32xf32, #tpu.memory_space<vmem>>, vector<8x32xf32>
    %16 = arith.mulf %14, %15 : vector<8x32xf32>
    %c0_8 = arith.constant 0 : index
    %c0_9 = arith.constant 0 : index
    %17 = vector.load %arg6[%c0_8, %c0_9] : memref<32x32xbf16, #tpu.memory_space<vmem>>, vector<32x32xbf16>
    %18 = arith.truncf %14 : vector<8x32xf32> to vector<8x32xbf16>
    %cst_10 = arith.constant dense<0.000000e+00> : vector<8x32xf32>
    %19 = tpu.matmul %18, %17, %cst_10 {dimension_numbers = #tpu.dot_dimension_numbers<[1], [1], [0], [0], [0, 0, 1, 0], [], []>} : vector<8x32xbf16>, vector<32x32xbf16>, vector<8x32xf32> -> vector<8x32xf32>
    %c0_11 = arith.constant 0 : index
    %c0_12 = arith.constant 0 : index
    %20 = vector.load %arg5[%c0_11, %c0_12] : memref<8x32xf32, #tpu.memory_space<vmem>>, vector<8x32xf32>
    %21 = arith.mulf %19, %20 : vector<8x32xf32>
    %22 = arith.addf %16, %21 : vector<8x32xf32>
    %c0_13 = arith.constant 0 : index
    %c0_14 = arith.constant 0 : index
    %23 = vector.load %arg7[%c0_13, %c0_14] : memref<8x8xf32, #tpu.memory_space<vmem>>, vector<8x8xf32>
    %c0_15 = arith.constant 0 : index
    %c0_16 = arith.constant 0 : index
    %24 = vector.load %arg8[%c0_15, %c0_16] : memref<8x8xf32, #tpu.memory_space<vmem>>, vector<8x8xf32>
    %cst_17 = arith.constant 0.000000e+00 : f32
    %25 = vector.broadcast %cst_17 : f32 to vector<8x32xf32>
    %26 = vector.extract_strided_slice %23 {offsets = [0, 0], sizes = [8, 1], strides = [1, 1]} : vector<8x8xf32> to vector<8x1xf32>
    %27 = vector.broadcast %26 : vector<8x1xf32> to vector<8x32xf32>
    %28 = arith.mulf %22, %27 : vector<8x32xf32>
    %29 = arith.negf %28 : vector<8x32xf32>
    %30 = math.exp %29 : vector<8x32xf32>
    %cst_18 = arith.constant 1.000000e+00 : f32
    %31 = vector.broadcast %cst_18 : f32 to vector<8x32xf32>
    %32 = arith.addf %31, %30 : vector<8x32xf32>
    %33 = arith.divf %31, %32 : vector<8x32xf32>
    %34 = arith.mulf %28, %33 : vector<8x32xf32>
    %35 = vector.extract_strided_slice %24 {offsets = [0, 0], sizes = [8, 1], strides = [1, 1]} : vector<8x8xf32> to vector<8x1xf32>
    %36 = vector.broadcast %35 : vector<8x1xf32> to vector<8x32xf32>
    %37 = arith.mulf %34, %36 : vector<8x32xf32>
    %38 = arith.addf %25, %37 : vector<8x32xf32>
    %39 = vector.extract_strided_slice %23 {offsets = [0, 1], sizes = [8, 1], strides = [1, 1]} : vector<8x8xf32> to vector<8x1xf32>
    %40 = vector.broadcast %39 : vector<8x1xf32> to vector<8x32xf32>
    %41 = arith.mulf %22, %40 : vector<8x32xf32>
    %42 = arith.negf %41 : vector<8x32xf32>
    %43 = math.exp %42 : vector<8x32xf32>
    %cst_19 = arith.constant 1.000000e+00 : f32
    %44 = vector.broadcast %cst_19 : f32 to vector<8x32xf32>
    %45 = arith.addf %44, %43 : vector<8x32xf32>
    %46 = arith.divf %44, %45 : vector<8x32xf32>
    %47 = arith.mulf %41, %46 : vector<8x32xf32>
    %48 = vector.extract_strided_slice %24 {offsets = [0, 1], sizes = [8, 1], strides = [1, 1]} : vector<8x8xf32> to vector<8x1xf32>
    %49 = vector.broadcast %48 : vector<8x1xf32> to vector<8x32xf32>
    %50 = arith.mulf %47, %49 : vector<8x32xf32>
    %51 = arith.addf %38, %50 : vector<8x32xf32>
    %52 = vector.extract_strided_slice %23 {offsets = [0, 2], sizes = [8, 1], strides = [1, 1]} : vector<8x8xf32> to vector<8x1xf32>
    %53 = vector.broadcast %52 : vector<8x1xf32> to vector<8x32xf32>
    %54 = arith.mulf %22, %53 : vector<8x32xf32>
    %55 = arith.negf %54 : vector<8x32xf32>
    %56 = math.exp %55 : vector<8x32xf32>
    %cst_20 = arith.constant 1.000000e+00 : f32
    %57 = vector.broadcast %cst_20 : f32 to vector<8x32xf32>
    %58 = arith.addf %57, %56 : vector<8x32xf32>
    %59 = arith.divf %57, %58 : vector<8x32xf32>
    %60 = arith.mulf %54, %59 : vector<8x32xf32>
    %61 = vector.extract_strided_slice %24 {offsets = [0, 2], sizes = [8, 1], strides = [1, 1]} : vector<8x8xf32> to vector<8x1xf32>
    %62 = vector.broadcast %61 : vector<8x1xf32> to vector<8x32xf32>
    %63 = arith.mulf %60, %62 : vector<8x32xf32>
    %64 = arith.addf %51, %63 : vector<8x32xf32>
    %65 = vector.extract_strided_slice %23 {offsets = [0, 3], sizes = [8, 1], strides = [1, 1]} : vector<8x8xf32> to vector<8x1xf32>
    %66 = vector.broadcast %65 : vector<8x1xf32> to vector<8x32xf32>
    %67 = arith.mulf %22, %66 : vector<8x32xf32>
    %68 = arith.negf %67 : vector<8x32xf32>
    %69 = math.exp %68 : vector<8x32xf32>
    %cst_21 = arith.constant 1.000000e+00 : f32
    %70 = vector.broadcast %cst_21 : f32 to vector<8x32xf32>
    %71 = arith.addf %70, %69 : vector<8x32xf32>
    %72 = arith.divf %70, %71 : vector<8x32xf32>
    %73 = arith.mulf %67, %72 : vector<8x32xf32>
    %74 = vector.extract_strided_slice %24 {offsets = [0, 3], sizes = [8, 1], strides = [1, 1]} : vector<8x8xf32> to vector<8x1xf32>
    %75 = vector.broadcast %74 : vector<8x1xf32> to vector<8x32xf32>
    %76 = arith.mulf %73, %75 : vector<8x32xf32>
    %77 = arith.addf %64, %76 : vector<8x32xf32>
    %78 = vector.extract_strided_slice %23 {offsets = [0, 4], sizes = [8, 1], strides = [1, 1]} : vector<8x8xf32> to vector<8x1xf32>
    %79 = vector.broadcast %78 : vector<8x1xf32> to vector<8x32xf32>
    %80 = arith.mulf %22, %79 : vector<8x32xf32>
    %81 = arith.negf %80 : vector<8x32xf32>
    %82 = math.exp %81 : vector<8x32xf32>
    %cst_22 = arith.constant 1.000000e+00 : f32
    %83 = vector.broadcast %cst_22 : f32 to vector<8x32xf32>
    %84 = arith.addf %83, %82 : vector<8x32xf32>
    %85 = arith.divf %83, %84 : vector<8x32xf32>
    %86 = arith.mulf %80, %85 : vector<8x32xf32>
    %87 = vector.extract_strided_slice %24 {offsets = [0, 4], sizes = [8, 1], strides = [1, 1]} : vector<8x8xf32> to vector<8x1xf32>
    %88 = vector.broadcast %87 : vector<8x1xf32> to vector<8x32xf32>
    %89 = arith.mulf %86, %88 : vector<8x32xf32>
    %90 = arith.addf %77, %89 : vector<8x32xf32>
    %91 = vector.extract_strided_slice %23 {offsets = [0, 5], sizes = [8, 1], strides = [1, 1]} : vector<8x8xf32> to vector<8x1xf32>
    %92 = vector.broadcast %91 : vector<8x1xf32> to vector<8x32xf32>
    %93 = arith.mulf %22, %92 : vector<8x32xf32>
    %94 = arith.negf %93 : vector<8x32xf32>
    %95 = math.exp %94 : vector<8x32xf32>
    %cst_23 = arith.constant 1.000000e+00 : f32
    %96 = vector.broadcast %cst_23 : f32 to vector<8x32xf32>
    %97 = arith.addf %96, %95 : vector<8x32xf32>
    %98 = arith.divf %96, %97 : vector<8x32xf32>
    %99 = arith.mulf %93, %98 : vector<8x32xf32>
    %100 = vector.extract_strided_slice %24 {offsets = [0, 5], sizes = [8, 1], strides = [1, 1]} : vector<8x8xf32> to vector<8x1xf32>
    %101 = vector.broadcast %100 : vector<8x1xf32> to vector<8x32xf32>
    %102 = arith.mulf %99, %101 : vector<8x32xf32>
    %103 = arith.addf %90, %102 : vector<8x32xf32>
    %104 = vector.extract_strided_slice %23 {offsets = [0, 6], sizes = [8, 1], strides = [1, 1]} : vector<8x8xf32> to vector<8x1xf32>
    %105 = vector.broadcast %104 : vector<8x1xf32> to vector<8x32xf32>
    %106 = arith.mulf %22, %105 : vector<8x32xf32>
    %107 = arith.negf %106 : vector<8x32xf32>
    %108 = math.exp %107 : vector<8x32xf32>
    %cst_24 = arith.constant 1.000000e+00 : f32
    %109 = vector.broadcast %cst_24 : f32 to vector<8x32xf32>
    %110 = arith.addf %109, %108 : vector<8x32xf32>
    %111 = arith.divf %109, %110 : vector<8x32xf32>
    %112 = arith.mulf %106, %111 : vector<8x32xf32>
    %113 = vector.extract_strided_slice %24 {offsets = [0, 6], sizes = [8, 1], strides = [1, 1]} : vector<8x8xf32> to vector<8x1xf32>
    %114 = vector.broadcast %113 : vector<8x1xf32> to vector<8x32xf32>
    %115 = arith.mulf %112, %114 : vector<8x32xf32>
    %116 = arith.addf %103, %115 : vector<8x32xf32>
    %117 = vector.extract_strided_slice %23 {offsets = [0, 7], sizes = [8, 1], strides = [1, 1]} : vector<8x8xf32> to vector<8x1xf32>
    %118 = vector.broadcast %117 : vector<8x1xf32> to vector<8x32xf32>
    %119 = arith.mulf %22, %118 : vector<8x32xf32>
    %120 = arith.negf %119 : vector<8x32xf32>
    %121 = math.exp %120 : vector<8x32xf32>
    %cst_25 = arith.constant 1.000000e+00 : f32
    %122 = vector.broadcast %cst_25 : f32 to vector<8x32xf32>
    %123 = arith.addf %122, %121 : vector<8x32xf32>
    %124 = arith.divf %122, %123 : vector<8x32xf32>
    %125 = arith.mulf %119, %124 : vector<8x32xf32>
    %126 = vector.extract_strided_slice %24 {offsets = [0, 7], sizes = [8, 1], strides = [1, 1]} : vector<8x8xf32> to vector<8x1xf32>
    %127 = vector.broadcast %126 : vector<8x1xf32> to vector<8x32xf32>
    %128 = arith.mulf %125, %127 : vector<8x32xf32>
    %129 = arith.addf %116, %128 : vector<8x32xf32>
    %130 = arith.mulf %22, %129 : vector<8x32xf32>
    %c0_26 = arith.constant 0 : index
    %c0_27 = arith.constant 0 : index
    %131 = vector.load %arg9[%c0_26, %c0_27] : memref<32x32xbf16, #tpu.memory_space<vmem>>, vector<32x32xbf16>
    %132 = arith.truncf %130 : vector<8x32xf32> to vector<8x32xbf16>
    %cst_28 = arith.constant dense<0.000000e+00> : vector<8x32xf32>
    %133 = tpu.matmul %132, %131, %cst_28 {dimension_numbers = #tpu.dot_dimension_numbers<[1], [1], [0], [0], [0, 0, 1, 0], [], []>} : vector<8x32xbf16>, vector<32x32xbf16>, vector<8x32xf32> -> vector<8x32xf32>
    %134 = arith.addf %1, %133 : vector<8x32xf32>
    %c0_29 = arith.constant 0 : index
    %c0_30 = arith.constant 0 : index
    %135 = vector.load %arg3[%c0_29, %c0_30] : memref<1x32xf32, #tpu.memory_space<vmem>>, vector<1x32xf32>
    %136 = arith.mulf %134, %134 : vector<8x32xf32>
    %cst_31 = arith.constant dense<0.000000e+00> : vector<8xf32>
    %137 = vector.multi_reduction <add>, %136, %cst_31 [1] : vector<8x32xf32> to vector<8xf32>
    %138 = vector.shape_cast %137 : vector<8xf32> to vector<8x1xf32>
    %cst_32 = arith.constant 3.200000e+01 : f32
    %139 = vector.broadcast %cst_32 : f32 to vector<8x1xf32>
    %140 = arith.divf %138, %139 : vector<8x1xf32>
    %cst_33 = arith.constant 9.99999974E-6 : f32
    %141 = vector.broadcast %cst_33 : f32 to vector<8x1xf32>
    %142 = arith.addf %140, %141 : vector<8x1xf32>
    %143 = math.rsqrt %142 : vector<8x1xf32>
    %144 = vector.broadcast %143 : vector<8x1xf32> to vector<8x32xf32>
    %145 = arith.mulf %134, %144 : vector<8x32xf32>
    %146 = vector.broadcast %135 : vector<1x32xf32> to vector<8x32xf32>
    %147 = arith.mulf %145, %146 : vector<8x32xf32>
    %c0_34 = arith.constant 0 : index
    %c0_35 = arith.constant 0 : index
    %148 = vector.load %arg10[%c0_34, %c0_35] : memref<128x32xbf16, #tpu.memory_space<vmem>>, vector<128x32xbf16>
    %149 = arith.truncf %147 : vector<8x32xf32> to vector<8x32xbf16>
    %cst_36 = arith.constant dense<0.000000e+00> : vector<8x128xf32>
    %150 = tpu.matmul %149, %148, %cst_36 {dimension_numbers = #tpu.dot_dimension_numbers<[1], [1], [0], [0], [0, 0, 1, 0], [], []>} : vector<8x32xbf16>, vector<128x32xbf16>, vector<8x128xf32> -> vector<8x128xf32>
    %151 = arith.negf %150 : vector<8x128xf32>
    %152 = math.exp %151 : vector<8x128xf32>
    %cst_37 = arith.constant 1.000000e+00 : f32
    %153 = vector.broadcast %cst_37 : f32 to vector<8x128xf32>
    %154 = arith.addf %153, %152 : vector<8x128xf32>
    %155 = arith.divf %153, %154 : vector<8x128xf32>
    %156 = arith.mulf %150, %155 : vector<8x128xf32>
    %c0_38 = arith.constant 0 : index
    %c0_39 = arith.constant 0 : index
    %157 = vector.load %arg12[%c0_38, %c0_39] : memref<128x32xbf16, #tpu.memory_space<vmem>>, vector<128x32xbf16>
    %158 = arith.truncf %147 : vector<8x32xf32> to vector<8x32xbf16>
    %cst_40 = arith.constant dense<0.000000e+00> : vector<8x128xf32>
    %159 = tpu.matmul %158, %157, %cst_40 {dimension_numbers = #tpu.dot_dimension_numbers<[1], [1], [0], [0], [0, 0, 1, 0], [], []>} : vector<8x32xbf16>, vector<128x32xbf16>, vector<8x128xf32> -> vector<8x128xf32>
    %160 = arith.mulf %156, %159 : vector<8x128xf32>
    %c0_41 = arith.constant 0 : index
    %c0_42 = arith.constant 0 : index
    %161 = vector.load %arg11[%c0_41, %c0_42] : memref<32x128xbf16, #tpu.memory_space<vmem>>, vector<32x128xbf16>
    %162 = arith.truncf %160 : vector<8x128xf32> to vector<8x128xbf16>
    %cst_43 = arith.constant dense<0.000000e+00> : vector<8x32xf32>
    %163 = tpu.matmul %162, %161, %cst_43 {dimension_numbers = #tpu.dot_dimension_numbers<[1], [1], [0], [0], [0, 0, 1, 0], [], []>} : vector<8x128xbf16>, vector<32x128xbf16>, vector<8x32xf32> -> vector<8x32xf32>
    %164 = arith.addf %134, %163 : vector<8x32xf32>
    %c0_44 = arith.constant 0 : index
    %c0_45 = arith.constant 0 : index
    %c0_46 = arith.constant 0 : index
    %165 = vector.load %arg13[%c0_44, %c0_45, %c0_46] : memref<1x8x32xf32, #tpu.memory_space<vmem>>, vector<1x8x32xf32>
    %166 = vector.shape_cast %165 : vector<1x8x32xf32> to vector<8x32xf32>
    %167 = vector.shape_cast %164 : vector<8x32xf32> to vector<1x8x32xf32>
    tpu.vector_store %arg13[%c0_44, %c0_45, %c0_46], %167 {strides = array<i32>} : memref<1x8x32xf32, #tpu.memory_space<vmem>>, vector<1x8x32xf32>,
    return
  }
  func.func @transform_0(%arg0: i32) -> (i32, i32, i32) {
    %c0_i32 = arith.constant 0 : i32
    %c0_i32_0 = arith.constant 0 : i32
    %c0_i32_1 = arith.constant 0 : i32
    return %arg0, %c0_i32, %c0_i32_0 : i32, i32, i32
  }
  func.func @transform_1(%arg0: i32) -> (i32, i32) {
    %c0_i32 = arith.constant 0 : i32
    %c0_i32_0 = arith.constant 0 : i32
    %c0_i32_1 = arith.constant 0 : i32
    return %c0_i32, %c0_i32_0 : i32, i32
  }
  func.func @transform_2(%arg0: i32) -> (i32, i32) {
    %c0_i32 = arith.constant 0 : i32
    %c0_i32_0 = arith.constant 0 : i32
    %c0_i32_1 = arith.constant 0 : i32
    return %c0_i32, %c0_i32_0 : i32, i32
  }
  func.func @transform_3(%arg0: i32) -> (i32, i32) {
    %c0_i32 = arith.constant 0 : i32
    %c0_i32_0 = arith.constant 0 : i32
    %c0_i32_1 = arith.constant 0 : i32
    return %c0_i32, %c0_i32_0 : i32, i32
  }
  func.func @transform_4(%arg0: i32) -> (i32, i32) {
    %c0_i32 = arith.constant 0 : i32
    %c0_i32_0 = arith.constant 0 : i32
    %c0_i32_1 = arith.constant 0 : i32
    return %c0_i32, %c0_i32_0 : i32, i32
  }
  func.func @transform_5(%arg0: i32) -> (i32, i32) {
    %c0_i32 = arith.constant 0 : i32
    %c0_i32_0 = arith.constant 0 : i32
    %c0_i32_1 = arith.constant 0 : i32
    return %c0_i32, %c0_i32_0 : i32, i32
  }
  func.func @transform_6(%arg0: i32) -> (i32, i32) {
    %c0_i32 = arith.constant 0 : i32
    %c0_i32_0 = arith.constant 0 : i32
    %c0_i32_1 = arith.constant 0 : i32
    return %c0_i32, %c0_i32_0 : i32, i32
  }
  func.func @transform_7(%arg0: i32) -> (i32, i32) {
    %c0_i32 = arith.constant 0 : i32
    %c0_i32_0 = arith.constant 0 : i32
    %c0_i32_1 = arith.constant 0 : i32
    return %c0_i32, %c0_i32_0 : i32, i32
  }
  func.func @transform_8(%arg0: i32) -> (i32, i32) {
    %c0_i32 = arith.constant 0 : i32
    %c0_i32_0 = arith.constant 0 : i32
    %c0_i32_1 = arith.constant 0 : i32
    return %c0_i32, %c0_i32_0 : i32, i32
  }
  func.func @transform_9(%arg0: i32) -> (i32, i32) {
    %c0_i32 = arith.constant 0 : i32
    %c0_i32_0 = arith.constant 0 : i32
    %c0_i32_1 = arith.constant 0 : i32
    return %c0_i32, %c0_i32_0 : i32, i32
  }
  func.func @transform_10(%arg0: i32) -> (i32, i32) {
    %c0_i32 = arith.constant 0 : i32
    %c0_i32_0 = arith.constant 0 : i32
    %c0_i32_1 = arith.constant 0 : i32
    return %c0_i32, %c0_i32_0 : i32, i32
  }
  func.func @transform_11(%arg0: i32) -> (i32, i32) {
    %c0_i32 = arith.constant 0 : i32
    %c0_i32_0 = arith.constant 0 : i32
    %c0_i32_1 = arith.constant 0 : i32
    return %c0_i32, %c0_i32_0 : i32, i32
  }
  func.func @transform_12(%arg0: i32) -> (i32, i32, i32) {
    %c0_i32 = arith.constant 0 : i32
    %c0_i32_0 = arith.constant 0 : i32
    %c0_i32_1 = arith.constant 0 : i32
    return %arg0, %c0_i32, %c0_i32_0 : i32, i32, i32
  }
}

module attributes {stable_mosaic.version = 11 : i64} {
  func.func @lm_head_kernel(%arg0: i32, %arg1: memref<1x8x32xf32, #tpu.memory_space<vmem>>, %arg2: memref<1x32xf32, #tpu.memory_space<vmem>>, %arg3: memref<64x32xbf16, #tpu.memory_space<vmem>>, %arg4: memref<1x8x64xf32, #tpu.memory_space<vmem>>) attributes {dimension_semantics = [#tpu.dimension_semantics<parallel>], iteration_bounds = array<i64: 2>, scalar_prefetch = 0 : i64, scratch_operands = 0 : i64, tpu.core_type = #tpu.core_type<tc>, window_params = [{transform_indices = @transform_0, window_bounds = array<i64: 1, 8, 32>}, {pipeline_mode = #tpu.pipeline_mode<synchronous>, transform_indices = @transform_1, window_bounds = array<i64: 1, 32>}, {pipeline_mode = #tpu.pipeline_mode<synchronous>, transform_indices = @transform_2, window_bounds = array<i64: 64, 32>}, {transform_indices = @transform_3, window_bounds = array<i64: 1, 8, 64>}]} {
    %c0 = arith.constant 0 : index
    %c0_0 = arith.constant 0 : index
    %c0_1 = arith.constant 0 : index
    %0 = vector.load %arg1[%c0, %c0_0, %c0_1] : memref<1x8x32xf32, #tpu.memory_space<vmem>>, vector<1x8x32xf32>
    %1 = vector.shape_cast %0 : vector<1x8x32xf32> to vector<8x32xf32>
    %c0_2 = arith.constant 0 : index
    %c0_3 = arith.constant 0 : index
    %2 = vector.load %arg2[%c0_2, %c0_3] : memref<1x32xf32, #tpu.memory_space<vmem>>, vector<1x32xf32>
    %3 = arith.mulf %1, %1 : vector<8x32xf32>
    %cst = arith.constant dense<0.000000e+00> : vector<8xf32>
    %4 = vector.multi_reduction <add>, %3, %cst [1] : vector<8x32xf32> to vector<8xf32>
    %5 = vector.shape_cast %4 : vector<8xf32> to vector<8x1xf32>
    %cst_4 = arith.constant 3.200000e+01 : f32
    %6 = vector.broadcast %cst_4 : f32 to vector<8x1xf32>
    %7 = arith.divf %5, %6 : vector<8x1xf32>
    %cst_5 = arith.constant 9.99999974E-6 : f32
    %8 = vector.broadcast %cst_5 : f32 to vector<8x1xf32>
    %9 = arith.addf %7, %8 : vector<8x1xf32>
    %10 = math.rsqrt %9 : vector<8x1xf32>
    %11 = vector.broadcast %10 : vector<8x1xf32> to vector<8x32xf32>
    %12 = arith.mulf %1, %11 : vector<8x32xf32>
    %13 = vector.broadcast %2 : vector<1x32xf32> to vector<8x32xf32>
    %14 = arith.mulf %12, %13 : vector<8x32xf32>
    %c0_6 = arith.constant 0 : index
    %c0_7 = arith.constant 0 : index
    %15 = vector.load %arg3[%c0_6, %c0_7] : memref<64x32xbf16, #tpu.memory_space<vmem>>, vector<64x32xbf16>
    %16 = arith.truncf %14 : vector<8x32xf32> to vector<8x32xbf16>
    %cst_8 = arith.constant dense<0.000000e+00> : vector<8x64xf32>
    %17 = tpu.matmul %16, %15, %cst_8 {dimension_numbers = #tpu.dot_dimension_numbers<[1], [1], [0], [0], [0, 0, 1, 0], [], []>} : vector<8x32xbf16>, vector<64x32xbf16>, vector<8x64xf32> -> vector<8x64xf32>
    %c0_9 = arith.constant 0 : index
    %c0_10 = arith.constant 0 : index
    %c0_11 = arith.constant 0 : index
    %18 = vector.load %arg4[%c0_9, %c0_10, %c0_11] : memref<1x8x64xf32, #tpu.memory_space<vmem>>, vector<1x8x64xf32>
    %19 = vector.shape_cast %18 : vector<1x8x64xf32> to vector<8x64xf32>
    %20 = vector.shape_cast %17 : vector<8x64xf32> to vector<1x8x64xf32>
    tpu.vector_store %arg4[%c0_9, %c0_10, %c0_11], %20 {strides = array<i32>} : memref<1x8x64xf32, #tpu.memory_space<vmem>>, vector<1x8x64xf32>,
    return
  }
  func.func @transform_0(%arg0: i32) -> (i32, i32, i32) {
    %c0_i32 = arith.constant 0 : i32
    %c0_i32_0 = arith.constant 0 : i32
    %c0_i32_1 = arith.constant 0 : i32
    return %arg0, %c0_i32, %c0_i32_0 : i32, i32, i32
  }
  func.func @transform_1(%arg0: i32) -> (i32, i32) {
    %c0_i32 = arith.constant 0 : i32
    %c0_i32_0 = arith.constant 0 : i32
    %c0_i32_1 = arith.constant 0 : i32
    return %c0_i32, %c0_i32_0 : i32, i32
  }
  func.func @transform_2(%arg0: i32) -> (i32, i32) {
    %c0_i32 = arith.constant 0 : i32
    %c0_i32_0 = arith.constant 0 : i32
    %c0_i32_1 = arith.constant 0 : i32
    return %c0_i32, %c0_i32_0 : i32, i32
  }
  func.func @transform_3(%arg0: i32) -> (i32, i32, i32) {
    %c0_i32 = arith.constant 0 : i32
    %c0_i32_0 = arith.constant 0 : i32
    %c0_i32_1 = arith.constant 0 : i32
    return %arg0, %c0_i32, %c0_i32_0 : i32, i32, i32
  }
}

</mosaic_0001>

<bundles_post_ra>
// kernel: tile.6
= control target key start
LH: loop header
LB: loop body
LE: loop exit
PB: predicated region body
PF: predicated region fallthrough
CT: control target
= control target key end

     0   :  { %s28_s0 = inlined_call_operand.vmem [shape: f32[2], index: 0, kind: input, shape index: {}]   ;;  %s29_s1 = inlined_call_operand.vmem [shape: f32[16,2], index: 1, kind: output, shape index: {}]  }
   0x1   :  { %v4_v0 = vld [vmem:[%s28_s0] ss:$0 sm:$0xff] }
   0x2   :  { %5 = vst [vmem:[%s29_s1] sm:$0xff] %v4_v0 }
   0x3   :  { %8 = vst [vmem:[%s29_s1 + $0x8] sm:$0xff] %v4_v0 }

// kernel: mul.13
= control target key start
LH: loop header
LB: loop body
LE: loop exit
PB: predicated region body
PF: predicated region fallthrough
CT: control target
= control target key end

     0   :  { %s131_s10 = smov 30   ;;  %s132_s11 = smov 26   ;;  %vm3_vm0 = vcmask 15360   ;;  %vm9_vm1 = vcmask 261360   ;;  %vm15_vm2 = vcmask 244960   ;;  %vm21_vm3 = vcmask 228560   ;;  %s207_s0 = inlined_call_operand.vmem [shape: f32[16,2], index: 0, kind: input, shape index: {}]   ;;  %s208_s1 = inlined_call_operand.vmem [shape: f32[32], index: 1, kind: output, shape index: {}]  }
   0x1   :  { %v101_v0 = vld [vmem:[%s207_s0 + $0xf] sm:$0x1]   ;;  %v103_v1 = vld [vmem:[%s207_s0 + $0xd] sm:$0x1]   ;;  %v105_v2 = vld [vmem:[%s207_s0 + $0xb] sm:$0x1]  }
   0x2   :  { %7 = vrot.lane.b32.xlu0 %v101_v0, %s131_s10  ;;  %19 = vrot.lane.b32.xlu1 %v103_v1, %s132_s11  ;;  %s133_s14 = smov 22   ;;  %v102_v3 = vld [vmem:[%s207_s0 + $0xe] sm:$0x1]   ;;  %v104_v4 = vld [vmem:[%s207_s0 + $0xc] sm:$0x1]   ;;  %s134_s19 = smov 28  }
   0x3   :  { %31 = vrot.lane.b32.xlu2 %v105_v2, %s133_s14  ;;  %s135_s20 = smov 24   ;;  %v106_v5 = vld [vmem:[%s207_s0 + $0xa] sm:$0x1]   ;;  %s136_s23 = smov 20   ;;  %v107_v6 = vld [vmem:[%s207_s0 + $0x9] sm:$0x1]  }
   0x4   :  { %v108_v7 = vld [vmem:[%s207_s0 + $0x8] sm:$0x1]   ;;  %s137_s28 = smov 18   ;;  %s138_s29 = smov 16   ;;  %v109_v8 = vld [vmem:[%s207_s0 + $0x7] sm:$0x1]  }
   0x5   :  { %s139_s3 = smov 14   ;;  %v110_v9 = vld [vmem:[%s207_s0 + $0x6] sm:$0x1]   ;;  %v111_v10 = vld [vmem:[%s207_s0 + $0x5] sm:$0x1]   ;;  %s140_s8 = smov 12  }
   0x6   :  { %s141_s9 = smov 10   ;;  %v112_v11 = vld [vmem:[%s207_s0 + $0x4] sm:$0x1]   ;;  %s142_s12 = smov 8   ;;  %v113_v12 = vld [vmem:[%s207_s0 + $0x3] sm:$0x1]  }
   0x7   :  { %v114_v13 = vld [vmem:[%s207_s0 + $0x2] sm:$0x1]   ;;  %s143_s17 = smov 6   ;;  %s144_s18 = smov 4   ;;  %v115_v14 = vld [vmem:[%s207_s0 + $0x1] sm:$0x1]  }
   0x8   :  { %s145_s21 = smov 2   ;;  %v2_v15 = vld [vmem:[%s207_s0] sm:$0x1]   ;;  %vm27_vm4 = vcmask 212160   ;;  %vm33_vm5 = vcmask 195760   ;;  %vm39_vm6 = vcmask 179360  }
   0x9   :  { %4 = vst.msk [vmem:[#allocation0] sm:$0x1] %vm3_vm0, %v2_v15   ;;  %vm45_vm7 = vcmask 162960   ;;  %vm51_vm8 = vcmask 146560   ;;  %vm57_vm9 = vcmask 130160   ;;  %vm63_vm10 = vcmask 113760  }
   0xa   :  { %13 = vrot.lane.b32.xlu0 %v102_v3, %s134_s19  ;;  %25 = vrot.lane.b32.xlu1 %v104_v4, %s135_s20  ;;  %vm69_vm11 = vcmask 97360   ;;  %vm75_vm12 = vcmask 80960   ;;  %vm81_vm13 = vcmask 64560   ;;  %vm87_vm14 = vcmask 48160  }
   0xb   :  { %37 = vrot.lane.b32.xlu2 %v106_v5, %s136_s23  ;;  %vm93_vm15 = vcmask 31760  }
  0x12   :  { %43 = vrot.lane.b32.xlu0 %v107_v6, %s137_s28  ;;  %49 = vrot.lane.b32.xlu1 %v108_v7, %s138_s29 }
  0x13   :  { %55 = vrot.lane.b32.xlu2 %v109_v8, %s139_s3 }
  0x1a   :  { %61 = vrot.lane.b32.xlu0 %v110_v9, %s140_s8  ;;  %67 = vrot.lane.b32.xlu1 %v111_v10, %s141_s9 }
  0x1b   :  { %73 = vrot.lane.b32.xlu2 %v112_v11, %s142_s12 }
  0x22   :  { %79 = vrot.lane.b32.xlu0 %v113_v12, %s143_s17  ;;  %85 = vrot.lane.b32.xlu1 %v114_v13, %s144_s18 }
  0x23   :  { %91 = vrot.lane.b32.xlu2 %v115_v14, %s145_s21 }
  0x5d   :  { %v32_v16 = vpop.permute.xlu2 %31  }
  0x65   :  { %v38_v17 = vpop.permute.xlu2 %37  }
  0x6d   :  { %v56_v18 = vpop.permute.xlu2 %55  }
  0x74   :  { %v8_v19 = vpop.permute.xlu0 %7   ;;  %v20_v20 = vpop.permute.xlu1 %19  }
  0x75   :  { %10 = vst.msk [vmem:[#allocation0] sm:$0x1] %vm9_vm1, %v8_v19   ;;  %v74_v21 = vpop.permute.xlu2 %73  }
  0x7c   :  { %v14_v22 = vpop.permute.xlu0 %13   ;;  %v26_v23 = vpop.permute.xlu1 %25  }
  0x7d   :  { %16 = vst.msk [vmem:[#allocation0] sm:$0x1] %vm15_vm2, %v14_v22   ;;  %v92_v24 = vpop.permute.xlu2 %91  }
  0x7e   :  { %22 = vst.msk [vmem:[#allocation0] sm:$0x1] %vm21_vm3, %v20_v20  }
  0x7f   :  { %28 = vst.msk [vmem:[#allocation0] sm:$0x1] %vm27_vm4, %v26_v23  }
  0x80   :  { %34 = vst.msk [vmem:[#allocation0] sm:$0x1] %vm33_vm5, %v32_v16  }
  0x81   :  { %40 = vst.msk [vmem:[#allocation0] sm:$0x1] %vm39_vm6, %v38_v17  }
  0x84   :  { %v44_v25 = vpop.permute.xlu0 %43   ;;  %v50_v26 = vpop.permute.xlu1 %49  }
  0x85   :  { %46 = vst.msk [vmem:[#allocation0] sm:$0x1] %vm45_vm7, %v44_v25  }
  0x86   :  { %52 = vst.msk [vmem:[#allocation0] sm:$0x1] %vm51_vm8, %v50_v26  }
  0x87   :  { %58 = vst.msk [vmem:[#allocation0] sm:$0x1] %vm57_vm9, %v56_v18  }
  0x8c   :  { %v62_v27 = vpop.permute.xlu0 %61   ;;  %v68_v28 = vpop.permute.xlu1 %67  }
  0x8d   :  { %64 = vst.msk [vmem:[#allocation0] sm:$0x1] %vm63_vm10, %v62_v27  }
  0x8e   :  { %70 = vst.msk [vmem:[#allocation0] sm:$0x1] %vm69_vm11, %v68_v28  }
  0x8f   :  { %76 = vst.msk [vmem:[#allocation0] sm:$0x1] %vm75_vm12, %v74_v21  }
  0x94   :  { %v80_v29 = vpop.permute.xlu0 %79   ;;  %v86_v30 = vpop.permute.xlu1 %85  }
  0x95   :  { %82 = vst.msk [vmem:[#allocation0] sm:$0x1] %vm81_vm13, %v80_v29  }
  0x96   :  { %88 = vst.msk [vmem:[#allocation0] sm:$0x1] %vm87_vm14, %v86_v30  }
  0x97   :  { %94 = vst.msk [vmem:[#allocation0] sm:$0x1] %vm93_vm15, %v92_v24  }
  0x9e   :  { %v97_v31 = vld [vmem:[#allocation0] sm:$0x1] }
  0x9f   :  { %100 = vst [vmem:[%s208_s1] sm:$0x1] %v97_v31 }

// kernel: mixer_forward.5
= control target key start
LH: loop header
LB: loop body
LE: loop exit
PB: predicated region body
PF: predicated region fallthrough
CT: control target
= control target key end

     0   :  { %8 = vsyncpa [#allocation3], 0  ;;  %s599_s0 = inlined_call_operand.vmem [shape: f32[2,8,32], index: 0, kind: input, shape index: {}]   ;;  %s600_s1 = inlined_call_operand.vmem [shape: f32[1,32], index: 1, kind: input, shape index: {}]   ;;  %s601_s2 = inlined_call_operand.vmem [shape: bf16[64,32], index: 2, kind: input, shape index: {}]   ;;  %s602_s3 = inlined_call_operand.hbm [shape: f32[2,8,64], index: 3, kind: output, shape index: {}]  }
   0x1   :  { %10 = vsyncpa [#allocation3 + $0x1], 0  ;;  %s493_s12 = smov 0   ;;  %s495_s13 = smov 0  }
   0x2   :  { %s497_s14 = smov 0   ;;  %s499_s15 = smov 0  }
   0x3 LB: > { %s514_s16 = sadd.s32 4294967295, %s470_s15   ;;  %s332_s17 = sadd.s32 4294967294, %s470_s15   ;;  %s470_s15 = sphi %s499_s15, %s608_s15   ;;  %s466_s14 = sphi %s497_s14, %s607_s14   ;;  %s462_s13 = sphi %s495_s13, %s606_s13   ;;  %s458_s12 = sphi %s493_s12, %s605_s12  }
   0x4   : > { %s518_s18 = sadd.s32 1, %s470_s15   ;;  %s91_s19 = sadd.s32 1, %s466_s14 }
   0x5   : > { %s88_s20 = ssub.s32 %s470_s15, %s518_s18  ;;  %p101_p0 = scmp.ne.s32.totalorder %s466_s14, %s462_s13 }
   0x6   : > { %p89_p1 = scmp.eq.s32.totalorder %s88_s20, 0  ;;  %p102_p2 = scmp.eq.s32.totalorder %s514_s16, 1 }
   0x7   : > { %p107_p3 = scmp.ne.s32.totalorder %s462_s13, %s458_s12  ;;  %p108_p4 = scmp.eq.s32.totalorder %s332_s17, 1 }
   0x8   : > { %s529_s21 = scalar_select %p89_p1, %s466_s14, %s91_s19  }
   0x9   : > { %p531_p5 = por %p102_p2, %p101_p0  ;;  %p535_p6 = por %p108_p4, %p107_p3 }
   0xa   : > { %p335_p7 = scmp.ge.s32.totalorder %s470_s15, 1  ;;  %p139_p8 = scmp.lt.s32.totalorder %s470_s15, 3 }
   0xc   : > { %p140_p9 = pnand %p335_p7, %p139_p8 }
   0xd   : > { %p162_p10 = scmp.lt.s32.totalorder (!%p140_p9), %s514_s16, 1  ;;  %s159_s17 = sand.u32 (!%p140_p9), 1, %s462_s13  }
   0xe   : > { %143 = sbr.rel (%p140_p9) target bundleno = 305 (0x131), region = 32  ;;  %s356_s19 = sshll.u32 (!%p140_p9), %s514_s16, 3 }
   0xf   : > { %s336_s20 = sshll.u32 (!%p140_p9), %s159_s17, 3  ;;  %s428_s7 = scalar_lea.hbm (!%p140_p9), %s602_s3, 16 }
  0x13   : > { %v362_v0 = vld [vmem:[%s601_s2 + $0x18] sm:$0xff]  ;;  %vm170_vm0 = vcmask 261120   ;;  %s163_s26 = scalar_select %p162_p10, %s514_s16, 1  ;;  %v361_v5 = vld [vmem:[%s601_s2 + $0x10] sm:$0xff]  ;;  %v472_v6 = vmov 32.0   ;;  %v360_v9 = vld [vmem:[%s601_s2 + $0x8] sm:$0xff] }
  0x14   : > { %v240_v1 = vsel %vm170_vm0, %v362_v0, 0  ;;  %404 = vrcp.f32 %v472_v6  ;;  %v237_v7 = vsel %vm170_vm0, %v361_v5, 0  ;;  %v234_v10 = vsel %vm170_vm0, %v360_v9, 0  ;;  %v359_v13 = vld [vmem:[%s601_s2] sm:$0xff] }
  0x15   : > { %246 = vmatpush.bf16.xpose.msra.mxu0 %v240_v1  ;;  %s337_s27 = sshll.u32 %s163_s26, 3  ;;  %v231_v14 = vsel %vm170_vm0, %v359_v13, 0  ;;  %v403_v27 = vld [vmem:[%s600_s1] ss:$0 sm:$0xff]  ;;  %s268_s26 = scalar_lea.hbm %s602_s3, %s356_s19  ;;  %vm255_vm5 = vcmask 523264  }
  0x16   : > { %s165_s30 = scalar_lea.vmem %s599_s0, %s337_s27  ;;  %s161_s27 = scalar_lea.vmem [#allocation2], %s336_s20 }
  0x17   : > { %v167_v2 = vld [vmem:[%s165_s30] sm:$0xff]  ;;  %s270_s28 = sshll.u32 %s161_s27, 4  ;;  %s272_s29 = sshll.u32 %s268_s26, 4  ;;  %s271_s28 = int_to_ptr.vmem [resolvable:$true] %s270_s28  ;;  %s273_s29 = int_to_ptr.hbm [resolvable:$true] %s272_s29 }
  0x18   : > { %v169_v3 = vmul.f32 %v167_v2, %v167_v2  ;;  %s258_s30 = scalar_lea.sflag [#allocation3], %s159_s17  ;;  %s422_s4 = sshra.s32 %s273_s29, 4  ;;  %s423_s4 = int_to_ptr.hbm [resolvable:$true] %s422_s4 }
  0x19   : > { %s424_s5 = scalar_lea.hbm %s423_s4, 8  ;;  %p429_p0 = scmp.lt.s32.totalorder %s423_s4, %s602_s3 }
  0x1a   : > { %v171_v4 = vsel %vm170_vm0, %v169_v3, 0.0  ;;  %v405_v8 = vpop.eup %404  ;;  %p425_p11 = scmp.ne.s32.totalorder %s423_s4, %s424_s5  ;;  %p430_p1 = scmp.lt.s32.totalorder %s428_s7, %s424_s5 }
  0x1b   : > { %172 = vadd.xlane.f32.xlu0 %v171_v4  ;;  %v175_v11 = vmul.f32 32.0, %v405_v8  ;;  %vm179_vm1 = vweird.f32 %v405_v8 }
  0x1c   : > { %p426_p12 = pnand %p425_p11, %p531_p5  ;;  %p431_p2 = por %p430_p1, %p429_p0 }
  0x1d   : > { %247 = vmatpush.bf16.xpose.msra.mxu0 %v237_v7  ;;  %v176_v12 = vsub.f32 1.0, %v175_v11 }
  0x1e   : > { %p427_p13 = pneg %p426_p12 }
  0x1f   : > { %v177_v15 = vmul.f32 %v405_v8, %v176_v12 }
  0x20   : > { %p432_p3 = pnand %p431_p2, %p427_p13 }
  0x21   : > { %v178_v16 = vadd.f32 %v405_v8, %v177_v15 }
  0x23   : > { %v180_v17 = vsel %vm179_vm1, %v405_v8, %v178_v16 }
  0x25   : > { %248 = vmatpush.bf16.xpose.msra.mxu0 %v234_v10 }
  0x2d   : > { %249 = vmatpush.bf16.xpose.msra.mxu0 %v231_v14 }
  0x8e   : > { %v173_v18 = vpop.xlane.xlu0 %172 }
  0x8f   : > { %v181_v19 = vmul.f32 %v180_v17, %v173_v18 }
  0x91   : > { %v182_v20 = vadd.f32 1e-05, %v181_v19 }
  0x93   : > { %406 = vrsqrt.f32 %v182_v20  ;;  %vm189_vm3 = vweird.f32 %v182_v20 }
  0x99   : > { %v407_v21 = vpop.eup %406 }
  0x9a   : > { %v184_v22 = vmul.f32 %v407_v21, %v182_v20  ;;  %vm190_vm2 = vweird.f32 %v407_v21 }
  0x9b   : > { %vm191_vm4 = vmor %vm189_vm3, %vm190_vm2 }
  0x9c   : > { %v185_v23 = vmul.f32 %v407_v21, %v184_v22 }
  0x9e   : > { %v186_v24 = vmul.f32 0.5, %v185_v23 }
  0xa0   : > { %v187_v25 = vsub.f32 1.5, %v186_v24 }
  0xa2   : > { %v188_v26 = vmul.f32 %v407_v21, %v187_v25 }
  0xa4   : > { %v192_v28 = vsel %vm191_vm4, %v407_v21, %v188_v26 }
  0xa5   : > { %v193_v29 = vmul.f32 %v192_v28, %v167_v2 }
  0xa7   : > { %v197_v30 = vmul.f32 %v403_v27, %v193_v29 }
  0xa9   : > { %v206_v31 = vpack.c.bf16 %v197_v30, %v197_v30 }
  0xab   : > { %354 = vmatmul.msk.bf16.vlgmr.msra.gmra.mxu0 %vm170_vm0, %v206_v31 }
 0x128   : > { %v251_v32 = vpop.f32.mrf.mxu0 }
 0x129   : > { %256 = vst.msk [vmem:[%s161_s27] sm:$0xff] %vm255_vm5, %v251_v32 }
 0x12a   : > { %435 = shalt.err (!%p432_p3)
}
 0x12b   : > { %363 = dma.vmem_to_hbm [thread:$0]  (%p531_p5), %s271_s28, 128, %s273_s29, %s258_s30  }
 0x130   : > { %v253_v33 = vpop.f32.mrf.mxu0 }
 0x131 PF: > { %p369_p4 = scmp.ge.s32.totalorder %s470_s15, 2  ;;  %s284_s10 = sand.u32 1, %s458_s12  }
 0x132   : > { %s285_s11 = scalar_lea.sflag [#allocation3], %s284_s10 }
 0x133   : > { %p366_p7 = pnand %p369_p4, %p535_p6 }
 0x135   : > { %p367_p8 = pneg %p366_p7 }
 0x137   : > { %453 = dma.done.wait (%p367_p8), %s285_s11, 128  }
 0x138   : > { %455 = vsyncadd (%p367_p8), %s285_s11, 4294967168  ;;  %p13_p9 = scmp.ge.s32.totalorder %s518_s18, 4   ;;  %s605_s12 = smov %s462_s13 }
 0x139   : > { %s606_s13 = smov %s466_s14  ;;  %s607_s14 = smov %s529_s21 }
 0x13a   : > { %s608_s15 = smov %s518_s18  ;;  %15 = sbr.rel (!%p13_p9) target bundleno = 3 (0x3), region = 67 }
 0x13f   :  { %291 = vsyncpa [#allocation3], 1 }
 0x140   :  { %293 = vsyncpa [#allocation3 + $0x1], 1 }

// kernel: mixer_forward.3
= control target key start
LH: loop header
LB: loop body
LE: loop exit
PB: predicated region body
PF: predicated region fallthrough
CT: control target
= control target key end

     0   :  { %s1384_s21 = smov 0   ;;  %s1690_s0 = inlined_call_operand.vmem [shape: f32[2,8,32], index: 0, kind: input, shape index: {}]   ;;  %s1691_s1 = inlined_call_operand.vmem [shape: f32[1,32], index: 1, kind: input, shape index: {}]   ;;  %s1692_s2 = inlined_call_operand.vmem [shape: f32[1,32], index: 2, kind: input, shape index: {}]   ;;  %s1693_s3 = inlined_call_operand.vmem [shape: f32[8,32], index: 3, kind: input, shape index: {}]   ;;  %s1694_s4 = inlined_call_operand.vmem [shape: f32[8,32], index: 4, kind: input, shape index: {}]   ;;  %s1695_s5 = inlined_call_operand.vmem [shape: bf16[32,32], index: 5, kind: input, shape index: {}]   ;;  %s1696_s6 = inlined_call_operand.vmem [shape: f32[8,8], index: 6, kind: input, shape index: {}]   ;;  %s1697_s7 = inlined_call_operand.vmem [shape: f32[8,8], index: 7, kind: input, shape index: {}]   ;;  %s1698_s8 = inlined_call_operand.vmem [shape: bf16[32,32], index: 8, kind: input, shape index: {}]   ;;  %s1699_s9 = inlined_call_operand.vmem [shape: bf16[128,32], index: 9, kind: input, shape index: {}]   ;;  %s1700_s10 = inlined_call_operand.vmem [shape: bf16[32,128], index: 10, kind: input, shape index: {}]   ;;  %s1701_s11 = inlined_call_operand.vmem [shape: bf16[128,32], index: 11, kind: input, shape index: {}]   ;;  %s1702_s12 = inlined_call_operand.vmem [shape: f32[2,8,32], index: 12, kind: output, shape index: {}]  }
   0x1 LB: > { %s1092_s22 = sadd.s32 4294967295, %s1308_s21   ;;  %p1096_p0 = scmp.ge.s32.totalorder %s1308_s21, 1  ;;  %s1308_s21 = sphi %s1384_s21, %s22_s21  }
   0x2   : > { %p361_p1 = scmp.lt.s32.totalorder %s1308_s21, 3 }
   0x4   : > { %p362_p2 = pnand %p1096_p0, %p361_p1 }
   0x5   : > { %p401_p3 = scmp.lt.s32.totalorder (!%p362_p2), %s1092_s22, 1 }
   0x6   : > { %365 = sbr.rel (%p362_p2) target bundleno = 928 (0x3a0), region = 68 }
   0xb   : > { %s1714_s22 = smov (!%p401_p3, %s1092_s22), 1  ;;  %vm413_vm0 = vcmask 261120   ;;  %v1310_v3 = vmov 32.0   ;;  %v1203_v5 = vld [vmem:[%s1695_s5 + $0x8] sm:$0xff]  ;;  %v1311_v8 = vmov 1   ;;  %v483_v9 = vld [vmem:[%s1696_s6] sm:$0xff] }
   0xc   : > { %s1097_s23 = sshll.u32 %s1714_s22, 3  ;;  %1260 = vrcp.f32 %v1310_v3  ;;  %v465_v6 = vsel %vm413_vm0, %v1203_v5, 0  ;;  %1242 = vset.pattern.permute.xlu1 %v1311_v8  ;;  %v1202_v11 = vld [vmem:[%s1695_s5] sm:$0xff]  ;;  %v1312_v14 = vmov 2   ;;  %v1313_v17 = vmov 0  }
   0xd   : > { %s404_s26 = scalar_lea.vmem %s1690_s0, %s1097_s23  ;;  %473 = vmatpush.bf16.xpose.msra.mxu0 %v465_v6  ;;  %519 = vperm.xlu1 %1242, %v483_v9   ;;  %v462_v12 = vsel %vm413_vm0, %v1202_v11, 0  ;;  %v1314_v18 = vmov 3   ;;  %v1315_v21 = vmov 5   ;;  %v1316_v23 = vmov 4   ;;  %v484_v24 = vld [vmem:[%s1697_s7] sm:$0xff]  ;;  %s408_s25 = scalar_lea.vmem %s1702_s12, %s1097_s23 }
   0xe   : > { %v1400_v0 = vld [vmem:[%s404_s26] sm:$0xff]  ;;  %1241 = vset.pattern.permute.xlu0 %v1313_v17  ;;  %1244 = vset.pattern.permute.xlu2 %v1314_v18  ;;  %v1317_v26 = vmov 7   ;;  %v1318_v30 = vmov 6  }
   0xf   : > { %v412_v1 = vmul.f32 %v1400_v0, %v1400_v0  ;;  %581 = vperm.xlu2 %1244, %v483_v9   ;;  %v1258_v33 = vld [vmem:[%s1691_s1] ss:$0 sm:$0xff] }
  0x10   : > { %v441_v43 = vld [vmem:[%s1693_s3] sm:$0xff] }
  0x11   : > { %v414_v2 = vsel %vm413_vm0, %v412_v1, 0.0  ;;  %v480_v44 = vld [vmem:[%s1694_s4] sm:$0xff] }
  0x12   : > { %415 = vadd.xlane.f32.xlu0 %v414_v2  ;;  %v1261_v4 = vpop.eup %1260 }
  0x13   : > { %v418_v7 = vmul.f32 32.0, %v1261_v4  ;;  %vm422_vm1 = vweird.f32 %v1261_v4 }
  0x15   : > { %v419_v10 = vsub.f32 1.0, %v418_v7  ;;  %474 = vmatpush.bf16.xpose.msra.mxu0 %v462_v12  ;;  %1243 = vset.pattern.permute.xlu1 %v1312_v14 }
  0x16   : > { %550 = vperm.xlu1 %1243, %v483_v9  }
  0x17   : > { %v420_v13 = vmul.f32 %v1261_v4, %v419_v10  ;;  %1245 = vset.pattern.permute.xlu2 %v1316_v23 }
  0x18   : > { %612 = vperm.xlu2 %1245, %v483_v9  }
  0x19   : > { %v421_v15 = vadd.f32 %v1261_v4, %v420_v13 }
  0x1b   : > { %v1416_v16 = vsel %vm422_vm1, %v1261_v4, %v421_v15 }
  0x1e   : > { %1246 = vset.pattern.permute.xlu1 %v1315_v21 }
  0x1f   : > { %643 = vperm.xlu1 %1246, %v483_v9  }
  0x20   : > { %1247 = vset.pattern.permute.xlu2 %v1318_v30 }
  0x21   : > { %674 = vperm.xlu2 %1247, %v483_v9  }
  0x26   : > { %487 = vperm.xlu0 %1241, %v483_v9  }
  0x27   : > { %1248 = vset.pattern.permute.xlu1 %v1317_v26 }
  0x28   : > { %705 = vperm.xlu1 %1248, %v483_v9  }
  0x29   : > { %1249 = vset.pattern.permute.xlu2 %v1313_v17 }
  0x2a   : > { %513 = vperm.xlu2 %1249, %v484_v24  }
  0x2e   : > { %1254 = vset.pattern.permute.xlu0 %v1315_v21 }
  0x2f   : > { %668 = vperm.xlu0 %1254, %v484_v24  }
  0x30   : > { %1250 = vset.pattern.permute.xlu1 %v1311_v8 }
  0x31   : > { %544 = vperm.xlu1 %1250, %v484_v24  }
  0x32   : > { %1251 = vset.pattern.permute.xlu2 %v1312_v14 }
  0x33   : > { %575 = vperm.xlu2 %1251, %v484_v24  }
  0x37   : > { %1257 = vset.pattern.permute.xlu0 %v1317_v26 }
  0x39   : > { %1252 = vset.pattern.permute.xlu1 %v1314_v18 }
  0x3a   : > { %606 = vperm.xlu1 %1252, %v484_v24  }
  0x3b   : > { %1253 = vset.pattern.permute.xlu2 %v1316_v23 }
  0x3c   : > { %637 = vperm.xlu2 %1253, %v484_v24  }
  0x42   : > { %1255 = vset.pattern.permute.xlu1 %v1318_v30 }
  0x43   : > { %699 = vperm.xlu1 %1255, %v484_v24  }
  0x44   : > { %1256 = vset.pattern.permute.xlu2 %v1317_v26 }
  0x45   : > { %730 = vperm.xlu2 %1256, %v484_v24  }
  0x69   : > { %v582_v39 = vpop.permute.xlu2 %581 }
  0x72   : > { %v613_v41 = vpop.permute.xlu2 %612 }
  0x7b   : > { %v675_v54 = vpop.permute.xlu2 %674 }
  0x7f   : > { %v520_v38 = vpop.permute.xlu1 %519 }
  0x85   : > { %v416_v19 = vpop.xlane.xlu0 %415 }
  0x86   : > { %v424_v20 = vmul.f32 %v1416_v16, %v416_v19 }
  0x88   : > { %v425_v22 = vadd.f32 1e-05, %v424_v20  ;;  %v551_v40 = vpop.permute.xlu1 %550 }
  0x8a   : > { %1262 = vrsqrt.f32 %v425_v22  ;;  %vm432_vm3 = vweird.f32 %v425_v22 }
  0x90   : > { %v1263_v25 = vpop.eup %1262 }
  0x91   : > { %v427_v27 = vmul.f32 %v1263_v25, %v425_v22  ;;  %vm433_vm2 = vweird.f32 %v1263_v25  ;;  %v644_v42 = vpop.permute.xlu1 %643 }
  0x92   : > { %vm434_vm4 = vmor %vm432_vm3, %vm433_vm2 }
  0x93   : > { %v428_v28 = vmul.f32 %v1263_v25, %v427_v27 }
  0x95   : > { %v429_v29 = vmul.f32 0.5, %v428_v28 }
  0x97   : > { %v430_v31 = vsub.f32 1.5, %v429_v29 }
  0x98   : > { %v488_v48 = vpop.permute.xlu0 %487 }
  0x99   : > { %v431_v32 = vmul.f32 %v1263_v25, %v430_v31 }
  0x9a   : > { %v706_v57 = vpop.permute.xlu1 %705 }
  0x9b   : > { %v435_v34 = vsel %vm434_vm4, %v1263_v25, %v431_v32 }
  0x9c   : > { %v436_v35 = vmul.f32 %v435_v34, %v1400_v0 }
  0x9e   : > { %v440_v36 = vmul.f32 %v1258_v33, %v436_v35 }
  0xa0   : > { %v447_v37 = vpack.c.bf16 %v440_v36, %v440_v36  ;;  %v442_v46 = vmul.f32 %v441_v43, %v440_v36 }
  0xa2   : > { %1107 = vmatmul.msk.bf16.vlgmr.msra.gmra.mxu0 %vm413_vm0, %v447_v37 }
 0x11f   : > { %v476_v45 = vpop.f32.mrf.mxu0 }
 0x120   : > { %v481_v47 = vmul.f32 %v480_v44, %v476_v45  ;;  %v514_v44 = vpop.permute.xlu2 %513 }
 0x122   : > { %v1433_v49 = vadd.f32 %v481_v47, %v442_v46 }
 0x124   : > { %v1436_v50 = vmul.f32 %v488_v48, %v1433_v49  ;;  %v1439_v51 = vmul.f32 %v551_v40, %v1433_v49  ;;  %v1442_v52 = vmul.f32 %v520_v38, %v1433_v49  ;;  %v1445_v53 = vmul.f32 %v613_v41, %v1433_v49 }
 0x125   : > { %v1449_v56 = vmul.f32 %v582_v39, %v1433_v49  ;;  %v1454_v61 = vmul.f32 %v675_v54, %v1433_v49  ;;  %v1458_v63 = vmul.f32 %v706_v57, %v1433_v49  ;;  %v1469_v13 = vmul.f32 %v644_v42, %v1433_v49 }
 0x126   : > { %v1108_v55 = vmul.f32 -1.442695, %v1436_v50  ;;  %v1110_v59 = vmul.f32 -1.442695, %v1439_v51  ;;  %v1109_v60 = vmul.f32 -1.442695, %v1442_v52 }
 0x127   : > { %v478_v58 = vpop.f32.mrf.mxu0  ;;  %v1112_v62 = vmul.f32 -1.442695, %v1445_v53  ;;  %v1111_v1 = vmul.f32 -1.442695, %v1449_v56  ;;  %v1114_v2 = vmul.f32 -1.442695, %v1454_v61 }
 0x128   : > { %1264 = vpow2.f32 %v1108_v55  ;;  %v1115_v3 = vmul.f32 -1.442695, %v1458_v63  ;;  %v1113_v19 = vmul.f32 -1.442695, %v1469_v13 }
 0x129   : > { %1266 = vpow2.f32 %v1110_v59 }
 0x12a   : > { %1268 = vpow2.f32 %v1109_v60 }
 0x12b   : > { %1270 = vpow2.f32 %v1112_v62 }
 0x12c   : > { %1272 = vpow2.f32 %v1111_v1 }
 0x12d   : > { %1274 = vpow2.f32 %v1114_v2 }
 0x12e   : > { %v1265_v4 = vpop.eup %1264  ;;  %1276 = vpow2.f32 %v1115_v3 }
 0x12f   : > { %v1267_v5 = vpop.eup %1266  ;;  %v494_v6 = vadd.f32 1.0, %v1265_v4 }
 0x130   : > { %v1269_v7 = vpop.eup %1268  ;;  %v1463_v8 = vadd.f32 1.0, %v1267_v5  ;;  %v1205_v5 = vld [vmem:[%s1698_s8 + $0x8] sm:$0xff] }
 0x131   : > { %v1271_v9 = vpop.eup %1270  ;;  %1278 = vrcp.f32 %v494_v6  ;;  %v526_v11 = vadd.f32 1.0, %v1269_v7  ;;  %vm500_vm5 = vweird.f32 %v494_v6  ;;  %v504_v32 = vand.u32 2147483647, %v494_v6 }
 0x132   : > { %v1273_v10 = vpop.eup %1272  ;;  %1280 = vrcp.f32 %v1463_v8  ;;  %v1466_v12 = vadd.f32 1.0, %v1271_v9  ;;  %v506_v36 = vand.u32 2147483648, %v494_v6  ;;  %v569_v46 = vand.u32 2147483648, %v1463_v8  ;;  %v1214_v9 = vld [vmem:[%s1701_s11] sm:$0xff] }
 0x133   : > { %v1471_v14 = vadd.f32 1.0, %v1273_v10  ;;  %v1275_v15 = vpop.eup %1274  ;;  %1282 = vrcp.f32 %v526_v11  ;;  %v536_v37 = vand.u32 2147483647, %v526_v11  ;;  %v538_v38 = vand.u32 2147483648, %v526_v11 }
 0x134   : > { %v1277_v17 = vpop.eup %1276  ;;  %1284 = vrcp.f32 %v1466_v12  ;;  %v1478_v21 = vadd.f32 1.0, %v1275_v15  ;;  %vm505_vm9 = vcmp.eq.f32.partialorder %v504_v32, 8.507059e+37  ;;  %vm532_vm10 = vweird.f32 %v526_v11 }
 0x135   : > { %1286 = vrcp.f32 %v1471_v14  ;;  %v1480_v23 = vadd.f32 1.0, %v1277_v17  ;;  %v507_v57 = vor.u32 1.1754944e-38, %v506_v36  ;;  %vm537_vm12 = vcmp.eq.f32.partialorder %v536_v37, 8.507059e+37 }
 0x136   : > { %1288 = vpow2.f32 %v1113_v19  ;;  %v539_v58 = vor.u32 1.1754944e-38, %v538_v38  ;;  %vm563_vm14 = vweird.f32 %v1463_v8  ;;  %v570_v10 = vor.u32 1.1754944e-38, %v569_v46  ;;  %v545_v19 = vpop.permute.xlu1 %544 }
 0x137   : > { %v1279_v18 = vpop.eup %1278  ;;  %1290 = vrcp.f32 %v1478_v21  ;;  %vm594_vm3 = vweird.f32 %v1471_v14  ;;  %v629_v36 = vand.u32 2147483647, %v1466_v12 }
 0x138   : > { %v1476_v20 = vpop.eup %1280  ;;  %v496_v22 = vmul.f32 %v1279_v18, %v494_v6  ;;  %1292 = vrcp.f32 %v1480_v23  ;;  %vm501_vm6 = vweird.f32 %v1279_v18  ;;  %v567_v6 = vand.u32 2147483647, %v1463_v8 }
 0x139   : > { %v559_v24 = vmul.f32 %v1476_v20, %v1463_v8  ;;  %v1283_v26 = vpop.eup %1282  ;;  %vm1496_vm8 = vmor %vm500_vm5, %vm501_vm6  ;;  %vm564_vm13 = vweird.f32 %v1476_v20  ;;  %vm625_vm6 = vweird.f32 %v1466_v12 }
 0x13a   : > { %v497_v25 = vsub.f32 1.0, %v496_v22  ;;  %v1484_v27 = vpop.eup %1284  ;;  %v528_v30 = vmul.f32 %v1283_v26, %v526_v11  ;;  %vm533_vm7 = vweird.f32 %v1283_v26  ;;  %vm1519_vm15 = vmor %vm563_vm14, %vm564_vm13  ;;  %v600_v22 = vand.u32 2147483648, %v1471_v14 }
 0x13b   : > { %v560_v29 = vsub.f32 1.0, %v559_v24  ;;  %v1487_v31 = vpop.eup %1286  ;;  %v621_v39 = vmul.f32 %v1484_v27, %v1466_v12  ;;  %vm534_vm11 = vmor %vm532_vm10, %vm533_vm7  ;;  %vm568_vm2 = vcmp.eq.f32.partialorder %v567_v6, 8.507059e+37  ;;  %vm626_vm4 = vweird.f32 %v1484_v27 }
 0x13c   : > { %v498_v28 = vmul.f32 %v1279_v18, %v497_v25  ;;  %v529_v34 = vsub.f32 1.0, %v528_v30  ;;  %v590_v35 = vmul.f32 %v1487_v31, %v1471_v14  ;;  %v1289_v43 = vpop.eup %1288  ;;  %vm595_vm1 = vweird.f32 %v1487_v31  ;;  %vm627_vm7 = vmor %vm625_vm6, %vm626_vm4 }
 0x13d   : > { %v561_v40 = vmul.f32 %v1476_v20, %v560_v29  ;;  %v1501_v47 = vpop.eup %1290  ;;  %v622_v59 = vsub.f32 1.0, %v621_v39  ;;  %v1532_v25 = vadd.f32 1.0, %v1289_v43  ;;  %vm1541_vm5 = vmor %vm594_vm3, %vm595_vm1  ;;  %v601_v37 = vor.u32 1.1754944e-38, %v600_v22 }
 0x13e   : > { %v499_v33 = vadd.f32 %v1279_v18, %v498_v28  ;;  %v530_v41 = vmul.f32 %v1283_v26, %v529_v34  ;;  %v591_v42 = vsub.f32 1.0, %v590_v35  ;;  %v1505_v55 = vpop.eup %1292  ;;  %v683_v4 = vmul.f32 %v1501_v47, %v1478_v21 }
 0x13f   : > { %v562_v60 = vadd.f32 %v1476_v20, %v561_v40  ;;  %v714_v7 = vmul.f32 %v1505_v55, %v1480_v23  ;;  %v623_v11 = vmul.f32 %v1484_v27, %v622_v59  ;;  %1294 = vrcp.f32 %v1532_v25 }
 0x140   : > { %v503_v48 = vsel %vm1496_vm8, %v1279_v18, %v499_v33  ;;  %v531_v54 = vadd.f32 %v1283_v26, %v530_v41  ;;  %v592_v1 = vmul.f32 %v1487_v31, %v591_v42  ;;  %v684_v24 = vsub.f32 1.0, %v683_v4 }
 0x141   : > { %v508_v2 = vsel %vm505_vm9, %v507_v57, %v503_v48  ;;  %v566_v17 = vsel %vm1519_vm15, %v1476_v20, %v562_v60  ;;  %v715_v28 = vsub.f32 1.0, %v714_v7  ;;  %v576_v20 = vpop.permute.xlu2 %575  ;;  %v631_v34 = vand.u32 2147483648, %v1466_v12 }
 0x142   : > { %v535_v62 = vsel %vm534_vm11, %v1283_v26, %v531_v54  ;;  %v510_v15 = vmul.f32 %v508_v2, %v1436_v50  ;;  %v593_v18 = vadd.f32 %v1487_v31, %v592_v1  ;;  %v758_v26 = vsel %vm413_vm0, %v1205_v5, 0  ;;  %v607_v54 = vpop.permute.xlu1 %606 }
 0x143   : > { %v540_v3 = vsel %vm537_vm12, %v539_v58, %v535_v62  ;;  %v598_v50 = vand.u32 2147483647, %v1471_v14  ;;  %766 = vmatpush.bf16.xpose.msra.mxu1 %v758_v26  ;;  %v571_v29 = vsel %vm568_vm2, %v570_v10, %v566_v17  ;;  %v1204_v14 = vld [vmem:[%s1698_s8] sm:$0xff]  ;;  %v685_v38 = vmul.f32 %v1501_v47, %v684_v24  ;;  %v669_v26 = vpop.permute.xlu0 %668 }
 0x144   : > { %v542_v8 = vmul.f32 %v540_v3, %v1442_v52  ;;  %v624_v52 = vadd.f32 %v1484_v27, %v623_v11  ;;  %v516_v32 = vmul.f32 %v514_v44, %v510_v15  ;;  %v597_v35 = vsel %vm1541_vm5, %v1487_v31, %v593_v18 }
 0x145   : > { %v573_v39 = vmul.f32 %v571_v29, %v1439_v51  ;;  %vm599_vm8 = vcmp.eq.f32.partialorder %v598_v50, 8.507059e+37  ;;  %v716_v42 = vmul.f32 %v1505_v55, %v715_v28  ;;  %v755_v43 = vsel %vm413_vm0, %v1204_v14, 0  ;;  %v1295_v45 = vpop.eup %1294 }
 0x146   : > { %v547_v33 = vmul.f32 %v545_v19, %v542_v8  ;;  %v628_v40 = vsel %vm627_vm7, %v1484_v27, %v624_v52  ;;  %v602_v41 = vsel %vm599_vm8, %v601_v37, %v597_v35  ;;  %v632_v31 = vor.u32 1.1754944e-38, %v631_v34 }
 0x147   : > { %vm630_vm9 = vcmp.eq.f32.partialorder %v629_v36, 8.507059e+37  ;;  %v686_v12 = vadd.f32 %v1501_v47, %v685_v38  ;;  %vm687_vm10 = vweird.f32 %v1478_v21  ;;  %vm688_vm11 = vweird.f32 %v1501_v47  ;;  %v1220_v38 = vld [vmem:[%s1701_s11 + $0x30] sm:$0xff] }
 0x148   : > { %v548_v44 = vadd.f32 %v547_v33, %v516_v32  ;;  %v578_v51 = vmul.f32 %v576_v20, %v573_v39  ;;  %v633_v46 = vsel %vm630_vm9, %v632_v31, %v628_v40  ;;  %v604_v48 = vmul.f32 %v602_v41, %v1449_v56  ;;  %vm1573_vm14 = vmor %vm687_vm10, %vm688_vm11  ;;  %v1211_v41 = vld [vmem:[%s1699_s9 + $0x28] sm:$0xff]  ;;  %v1210_v31 = vld [vmem:[%s1699_s9 + $0x20] sm:$0xff] }
 0x149   : > { %v652_v27 = vmul.f32 %v1295_v45, %v1532_v25  ;;  %v717_v57 = vadd.f32 %v1505_v55, %v716_v42  ;;  %vm719_vm12 = vweird.f32 %v1505_v55  ;;  %v691_v58 = vand.u32 2147483647, %v1478_v21  ;;  %v638_v2 = vpop.permute.xlu2 %637  ;;  %v1219_v42 = vld [vmem:[%s1701_s11 + $0x28] sm:$0xff]  ;;  %v1216_v56 = vld [vmem:[%s1701_s11 + $0x10] sm:$0xff] }
 0x14a   : > { %v693_v59 = vand.u32 2147483648, %v1478_v21  ;;  %v579_v60 = vadd.f32 %v578_v51, %v548_v44  ;;  %vm718_vm13 = vweird.f32 %v1480_v23  ;;  %v722_v62 = vand.u32 2147483647, %v1480_v23  ;;  %v700_v20 = vpop.permute.xlu1 %699 }
 0x14b   : > { %767 = vmatpush.bf16.xpose.msra.mxu1 %v755_v43  ;;  %v653_v1 = vsub.f32 1.0, %v652_v27  ;;  %v635_v3 = vmul.f32 %v633_v46, %v1445_v53  ;;  %v724_v4 = vand.u32 2147483648, %v1480_v23  ;;  %v690_v5 = vsel %vm1573_vm14, %v1501_v47, %v686_v12  ;;  %vm1583_vm15 = vmor %vm718_vm13, %vm719_vm12 }
 0x14c   : > { %v662_v6 = vand.u32 2147483648, %v1532_v25  ;;  %v609_v7 = vmul.f32 %v607_v54, %v604_v48  ;;  %vm657_vm1 = vweird.f32 %v1295_v45  ;;  %v660_v10 = vand.u32 2147483647, %v1532_v25  ;;  %v1209_v54 = vld [vmem:[%s1699_s9 + $0x18] sm:$0xff] }
 0x14d   : > { %v654_v21 = vmul.f32 %v1295_v45, %v653_v1  ;;  %v721_v53 = vsel %vm1583_vm15, %v1505_v55, %v717_v57  ;;  %v694_v23 = vor.u32 1.1754944e-38, %v693_v59  ;;  %vm692_vm2 = vcmp.eq.f32.partialorder %v691_v58, 8.507059e+37  ;;  %v1217_v57 = vld [vmem:[%s1701_s11 + $0x18] sm:$0xff] }
 0x14e   : > { %v610_v11 = vadd.f32 %v609_v7, %v579_v60  ;;  %vm656_vm3 = vweird.f32 %v1532_v25  ;;  %v725_v47 = vor.u32 1.1754944e-38, %v724_v4  ;;  %v663_v8 = vor.u32 1.1754944e-38, %v662_v6  ;;  %v1215_v4 = vld [vmem:[%s1701_s11 + $0x8] sm:$0xff]  ;;  %v1206_v7 = vld [vmem:[%s1699_s9] sm:$0xff] }
 0x14f   : > { %v655_v15 = vadd.f32 %v1295_v45, %v654_v21  ;;  %v695_v17 = vsel %vm692_vm2, %v694_v23, %v690_v5  ;;  %vm658_vm4 = vmor %vm656_vm3, %vm657_vm1  ;;  %v640_v18 = vmul.f32 %v638_v2, %v635_v3  ;;  %vm723_vm5 = vcmp.eq.f32.partialorder %v722_v62, 8.507059e+37  ;;  %v1208_v62 = vld [vmem:[%s1699_s9 + $0x10] sm:$0xff]  ;;  %v1207_v3 = vld [vmem:[%s1699_s9 + $0x8] sm:$0xff] }
 0x150   : > { %vm661_vm6 = vcmp.eq.f32.partialorder %v660_v10, 8.507059e+37  ;;  %v726_v22 = vsel %vm723_vm5, %v725_v47, %v721_v53  ;;  %v697_v50 = vmul.f32 %v695_v17, %v1454_v61  ;;  %v1213_v61 = vld [vmem:[%s1699_s9 + $0x38] sm:$0xff]  ;;  %v988_v40 = vsel %vm413_vm0, %v1220_v38, 0 }
 0x151   : > { %v659_v19 = vsel %vm658_vm4, %v1295_v45, %v655_v15  ;;  %v641_v55 = vadd.f32 %v640_v18, %v610_v11  ;;  %v728_v29 = vmul.f32 %v726_v22, %v1458_v63  ;;  %v731_v52 = vpop.permute.xlu2 %730  ;;  %v1221_v63 = vld [vmem:[%s1701_s11 + $0x38] sm:$0xff]  ;;  %v872_v43 = vsel %vm413_vm0, %v1211_v41, 0  ;;  %v1218_v45 = vld [vmem:[%s1701_s11 + $0x20] sm:$0xff] }
 0x152   : > { %v664_v24 = vsel %vm661_vm6, %v663_v8, %v659_v19  ;;  %v702_v30 = vmul.f32 %v700_v20, %v697_v50  ;;  %v991_v37 = vsel %vm413_vm0, %v1221_v63, 0  ;;  %v985_v44 = vsel %vm413_vm0, %v1219_v42, 0  ;;  %v1259_v22 = vld [vmem:[%s1692_s2] ss:$0 sm:$0xff] }
 0x153   : > { %v666_v28 = vmul.f32 %v664_v24, %v1469_v13  ;;  %v733_v32 = vmul.f32 %v731_v52, %v728_v29  ;;  %v878_v13 = vsel %vm413_vm0, %v1213_v61, 0  ;;  %993 = vmatpush.bf16.xpose.msra.mxu3 %v991_v37  ;;  %v869_v51 = vsel %vm413_vm0, %v1210_v31, 0 }
 0x154   : > { %880 = vmatpush.bf16.xpose.msra.mxu2 %v878_v13  ;;  %v982_v46 = vsel %vm413_vm0, %v1218_v45, 0  ;;  %v979_v60 = vsel %vm413_vm0, %v1217_v57, 0  ;;  %v863_v1 = vsel %vm413_vm0, %v1208_v62, 0  ;;  %v976_v2 = vsel %vm413_vm0, %v1216_v56, 0 }
 0x155   : > { %v671_v25 = vmul.f32 %v669_v26, %v666_v28  ;;  %v860_v5 = vsel %vm413_vm0, %v1207_v3, 0  ;;  %v973_v6 = vsel %vm413_vm0, %v1215_v4, 0  ;;  %v857_v21 = vsel %vm413_vm0, %v1206_v7, 0 }
 0x156   : > { %v970_v10 = vsel %vm413_vm0, %v1214_v9, 0 }
 0x157   : > { %v672_v14 = vadd.f32 %v671_v25, %v641_v55  ;;  %v1223_v55 = vld [vmem:[%s1700_s10 + $0x8] sm:$0xff]  ;;  %v1222_v25 = vld [vmem:[%s1700_s10] sm:$0xff] }
 0x158   : > { %1030 = vmatpush.bf16.xpose.msrb.mxu0 %v1223_v55 }
 0x159   : > { %v703_v33 = vadd.f32 %v702_v30, %v672_v14 }
 0x15b   : > { %v734_v34 = vadd.f32 %v733_v32, %v703_v33  ;;  %994 = vmatpush.bf16.xpose.msra.mxu3 %v988_v40 }
 0x15d   : > { %v735_v35 = vmul.f32 %v734_v34, %v1433_v49  ;;  %v1212_v49 = vld [vmem:[%s1699_s9 + $0x30] sm:$0xff] }
 0x15e   : > { %v875_v39 = vsel %vm413_vm0, %v1212_v49, 0 }
 0x15f   : > { %v740_v36 = vpack.c.bf16 %v735_v35, %v735_v35  ;;  %881 = vmatpush.bf16.xpose.msra.mxu2 %v875_v39 }
 0x160   : > { %1031 = vmatpush.bf16.xpose.msrb.mxu0 %v1222_v25 }
 0x161   : > { %1124 = vmatmul.msk.bf16.vlgmr.msra.gmra.mxu1 %vm413_vm0, %v740_v36 }
 0x163   : > { %995 = vmatpush.bf16.xpose.msra.mxu3 %v985_v44 }
 0x167   : > { %882 = vmatpush.bf16.xpose.msra.mxu2 %v872_v43 }
 0x16b   : > { %996 = vmatpush.bf16.xpose.msra.mxu3 %v982_v46 }
 0x16f   : > { %883 = vmatpush.bf16.xpose.msra.mxu2 %v869_v51 }
 0x173   : > { %997 = vmatpush.bf16.xpose.msra.mxu3 %v979_v60 }
 0x17b   : > { %998 = vmatpush.bf16.xpose.msra.mxu3 %v976_v2 }
 0x183   : > { %999 = vmatpush.bf16.xpose.msra.mxu3 %v973_v6 }
 0x18b   : > { %1000 = vmatpush.bf16.xpose.msra.mxu3 %v970_v10 }
 0x1de   : > { %v769_v12 = vpop.f32.mrf.mxu1 }
 0x1df   : > { %v1630_v48 = vadd.f32 %v769_v12, %v1400_v0  ;;  %v866_v0 = vsel %vm413_vm0, %v1209_v54, 0 }
 0x1e0   : > { %884 = vmatpush.bf16.xpose.msra.mxu2 %v866_v0 }
 0x1e1   : > { %v775_v27 = vmul.f32 %v1630_v48, %v1630_v48 }
 0x1e3   : > { %v776_v58 = vsel %vm413_vm0, %v775_v27, 0.0 }
 0x1e4   : > { %777 = vadd.xlane.f32.xlu1 %v776_v58 }
 0x1e6   : > { %v771_v59 = vpop.f32.mrf.mxu1 }
 0x1e8   : > { %885 = vmatpush.bf16.xpose.msra.mxu2 %v863_v1 }
 0x1f0   : > { %886 = vmatpush.bf16.xpose.msra.mxu2 %v860_v5 }
 0x1f8   : > { %887 = vmatpush.bf16.xpose.msra.mxu2 %v857_v21 }
 0x257   : > { %v778_v53 = vpop.xlane.xlu1 %777 }
 0x258   : > { %v779_v23 = vmul.f32 %v778_v53, %v1416_v16 }
 0x25a   : > { %v780_v11 = vadd.f32 1e-05, %v779_v23 }
 0x25c   : > { %1296 = vrsqrt.f32 %v780_v11  ;;  %vm787_vm8 = vweird.f32 %v780_v11 }
 0x262   : > { %v1297_v15 = vpop.eup %1296 }
 0x263   : > { %v782_v47 = vmul.f32 %v1297_v15, %v780_v11  ;;  %vm788_vm7 = vweird.f32 %v1297_v15 }
 0x264   : > { %vm789_vm9 = vmor %vm787_vm8, %vm788_vm7 }
 0x265   : > { %v783_v17 = vmul.f32 %v1297_v15, %v782_v47 }
 0x267   : > { %v784_v8 = vmul.f32 0.5, %v783_v17 }
 0x269   : > { %v785_v18 = vsub.f32 1.5, %v784_v8 }
 0x26b   : > { %v786_v19 = vmul.f32 %v1297_v15, %v785_v18 }
 0x26d   : > { %v790_v24 = vsel %vm789_vm9, %v1297_v15, %v786_v19 }
 0x26e   : > { %v791_v26 = vmul.f32 %v790_v24, %v1630_v48 }
 0x270   : > { %v795_v50 = vmul.f32 %v1259_v22, %v791_v26 }
 0x272   : > { %v812_v16 = vpack.c.bf16 %v795_v50, %v795_v50 }
 0x274   : > { %1157 = vmatmul.msk.bf16.vlgmr.msra.gmra.mxu2 %vm413_vm0, %v812_v16  ;;  %1191 = vmatmul.msk.bf16.vlgmr.msra.gmra.mxu3 %vm413_vm0, %v812_v16 }
 0x2f7   : > { %v889_v28 = vpop.f32.mrf.mxu2  ;;  %v1002_v20 = vpop.f32.mrf.mxu3 }
 0x2f8   : > { %v1158_v29 = vmul.f32 -1.442695, %v889_v28 }
 0x2fa   : > { %1298 = vpow2.f32 %v1158_v29 }
 0x2ff   : > { %v891_v52 = vpop.f32.mrf.mxu2  ;;  %v1004_v30 = vpop.f32.mrf.mxu3 }
 0x300   : > { %v1299_v14 = vpop.eup %1298 }
 0x301   : > { %v896_v32 = vadd.f32 1.0, %v1299_v14 }
 0x303   : > { %1300 = vrcp.f32 %v896_v32  ;;  %v908_v36 = vand.u32 2147483648, %v896_v32  ;;  %v906_v63 = vand.u32 2147483647, %v896_v32  ;;  %vm902_vm11 = vweird.f32 %v896_v32 }
 0x305   : > { %v909_v37 = vor.u32 1.1754944e-38, %v908_v36  ;;  %vm907_vm13 = vcmp.eq.f32.partialorder %v906_v63, 8.507059e+37 }
 0x309   : > { %v1301_v33 = vpop.eup %1300 }
 0x30a   : > { %v898_v34 = vmul.f32 %v1301_v33, %v896_v32  ;;  %vm903_vm10 = vweird.f32 %v1301_v33 }
 0x30b   : > { %vm904_vm12 = vmor %vm902_vm11, %vm903_vm10 }
 0x30c   : > { %v899_v35 = vsub.f32 1.0, %v898_v34 }
 0x30e   : > { %v900_v61 = vmul.f32 %v1301_v33, %v899_v35 }
 0x310   : > { %v901_v13 = vadd.f32 %v1301_v33, %v900_v61 }
 0x312   : > { %v905_v49 = vsel %vm904_vm12, %v1301_v33, %v901_v13 }
 0x313   : > { %v910_v38 = vsel %vm907_vm13, %v909_v37, %v905_v49 }
 0x314   : > { %v912_v39 = vmul.f32 %v910_v38, %v889_v28 }
 0x316   : > { %v1006_v40 = vmul.f32 %v1002_v20, %v912_v39 }
 0x318   : > { %v1011_v41 = vpack.c.bf16 %v1006_v40, %v1006_v40 }
 0x31a   : > { %1032 = vmatmul.bf16.vlgmr.msrb.gmra.mxu0 %v1011_v41 }
 0x397   : > { %v1033_v42 = vpop.f32.mrf.mxu0 }
 0x398   : > { %v1037_v43 = vadd.f32 %v1033_v42, %v1630_v48 }
 0x39a   : > { %1038 = vst.msk [vmem:[%s408_s25] sm:$0xff] %vm413_vm0, %v1037_v43 }
 0x39f   : > { %v1035_v44 = vpop.f32.mrf.mxu0 }
 0x3a0 PF: > { %s22_s21 = sadd.s32 1, %s1308_s21  }
 0x3a1   : > { %p19_p4 = scmp.ge.s32.totalorder %s22_s21, 4  }
 0x3a3   :  { %21 = sbr.rel (!%p19_p4) target bundleno = 1 (0x1), region = 98 }

</bundles_post_ra>
